<compile_context>
chip_gen: v7x
topology: tpu7x:2x2x1
jax: 0.10.0
libtpu: 0.0.40
codegen_flags: <defaults>
</compile_context>

<pallas_src>
import jax
import jax.numpy as jnp
from jax.experimental import pallas as pl
from jax.experimental.pallas import tpu as pltpu


def make_lstm_kernel(num_layers, seq_len, batch_pad, hidden):
    H = hidden
    B = batch_pad
    S = seq_len

    # The full-lane tricks (g_mask over 4H lanes, roll by 2H, single-vreg gates)
    # assume 4H == 128 and a sublane-aligned batch.  Guard explicitly.
    assert 4 * H == 128, "gate-lane tricks assume hidden_size == 32 (4H == 128)"
    assert B % 8 == 0, "padded batch must be a multiple of 8 sublanes"

    def kernel(*refs):
        # inputs : x2d (S*B, F) time-major, h0 (L,B,H), c0 (L,B,H),
        #          layer 0: w_ih0 (F,4H), w_hh0 (H,4H), b0 (1,4H)
        #          layer l>0: w_cat_l ([w_ih;w_hh] = (2H,4H)), b_l (1,4H)
        #          fc_w (1,H), fc_b (1,1)
        # outputs: out (B, 1)
        x2d_ref, h0_ref, c0_ref = refs[0], refs[1], refs[2]
        idx = 3
        w_ih0_ref, w_hh0_ref, b0_ref = refs[idx], refs[idx + 1], refs[idx + 2]
        idx += 3
        upper = []
        for _ in range(num_layers - 1):
            upper.append((refs[idx], refs[idx + 1]))
            idx += 2
        fcw_ref, fcb_ref = refs[idx], refs[idx + 1]
        out_ref = refs[idx + 2]

        # Lane mask selecting the g-gate block [2H, 3H) of the 4H-wide gates.
        lane = jax.lax.broadcasted_iota(jnp.int32, (B, 4 * H), dimension=1)
        g_mask = (lane >= 2 * H) & (lane < 3 * H)

        def cell(gates, c):
            # Single full-width EUP push: tanh(x) = 2*sigmoid(2x) - 1 on g-lanes.
            pre = jnp.where(g_mask, 2.0 * gates, gates)          # VPU
            y = jax.nn.sigmoid(pre)                              # EUP (1 push)
            act = jnp.where(g_mask, 2.0 * y - 1.0, y)            # [i | f | g | o]
            # roll by 2H -> [g | o | i | f]; full-width product puts i*g in [0,H)
            prod = act * pltpu.roll(act, shift=2 * H, axis=1)    # XLU + VPU
            i_times_g = prod[:, 0:H]
            f_g = act[:, H:2 * H]
            o_g = act[:, 3 * H:4 * H]
            c_new = f_g * c + i_times_g
            h_new = o_g * jnp.tanh(c_new)
            return h_new, c_new

        # Hoisted layer-0 input projection: one (S*B, F) x (F, 4H) matmul,
        # bias folded in.  Rows are time-major: rows [t*B, (t+1)*B).
        ih_all0 = (
            jnp.dot(x2d_ref[...], w_ih0_ref[...],
                    preferred_element_type=jnp.float32)
            + b0_ref[...]
        )                                                         # (S*B, 4H)

        w_hh0 = w_hh0_ref[...]                                    # hoist weight load
        upper_w = [(w_ref[...], b_ref[...]) for (w_ref, b_ref) in upper]

        h = [h0_ref[l] for l in range(num_layers)]                # each (B, H)
        c = [c0_ref[l] for l in range(num_layers)]

        # Per-timestep loop over all layers (wavefront interleave: layer l at
        # step t is independent of layer 0 at step t+1, so they can overlap).
        for t in range(S):
            # layer 0: single (B,H)x(H,4H) MXU push on the serial chain
            gates0 = ih_all0[t * B:(t + 1) * B, :] + jnp.dot(
                h[0], w_hh0, preferred_element_type=jnp.float32)
            h[0], c[0] = cell(gates0, c[0])

            # layers l > 0: one fused K=2H push on [h_below | h_prev]
            for l in range(1, num_layers):
                w_cat, b_l = upper_w[l - 1]
                xcat = jnp.concatenate([h[l - 1], h[l]], axis=1)  # (B, 2H)
                gates = jnp.dot(xcat, w_cat,
                                preferred_element_type=jnp.float32) + b_l
                h[l], c[l] = cell(gates, c[l])

        # final Linear (H -> 1): VPU multiply + lane reduction, no MXU push
        out_ref[...] = (
            jnp.sum(h[num_layers - 1] * fcw_ref[...], axis=-1, keepdims=True)
            + fcb_ref[...]
        )

    return kernel


def driver_feature_model(x, h0, c0, layer_params, fc_w, fc_b):
    B, S, F = x.shape
    L, _, H = h0.shape

    # pad batch to a multiple of 8 sublanes (vregs / MXU rows fully occupied)
    B_pad = ((B + 7) // 8) * 8
    pad_b = B_pad - B
    x_p = jnp.pad(x, ((0, pad_b), (0, 0), (0, 0)))
    h0_p = jnp.pad(h0, ((0, 0), (0, pad_b), (0, 0)))
    c0_p = jnp.pad(c0, ((0, 0), (0, pad_b), (0, 0)))

    # time-major 2-D layout: row (t*B_pad + b) = x[b, t, :]
    x2d = jnp.transpose(x_p, (1, 0, 2)).reshape(S * B_pad, F)

    # layer 0 keeps (w_ih, w_hh, b); layers l>0 get a stacked [w_ih; w_hh]
    # so the kernel does a single fused K=2H matmul per step.
    flat_w = list(layer_params[0])
    for (w_ih, w_hh, b) in layer_params[1:]:
        flat_w += [jnp.concatenate([w_ih, w_hh], axis=0), b]

    n_inputs = 3 + len(flat_w) + 2
    vmem = pl.BlockSpec(memory_space=pltpu.MemorySpace.VMEM)

    fn = pl.pallas_call(
        make_lstm_kernel(L, S, B_pad, H),
        out_shape=jax.ShapeDtypeStruct((B_pad, 1), jnp.float32),
        in_specs=[vmem] * n_inputs,
        out_specs=vmem,
    )
    out = fn(x2d, h0_p, c0_p, *flat_w, fc_w, fc_b)
    return out[:B]


def driver_feature_model_ref(x, h0, c0, layer_params, fc_w, fc_b):
    """Pure-JAX reference for correctness check."""
    B, S, _ = x.shape
    H = h0.shape[-1]
    layer_in = x
    for l, (w_ih, w_hh, b) in enumerate(layer_params):
        h, c = h0[l], c0[l]
        outs = []
        for t in range(S):
            gates = layer_in[:, t, :] @ w_ih + h @ w_hh + b
            i_g = jax.nn.sigmoid(gates[:, :H])
            f_g = jax.nn.sigmoid(gates[:, H:2 * H])
            g_g = jnp.tanh(gates[:, 2 * H:3 * H])
            o_g = jax.nn.sigmoid(gates[:, 3 * H:])
            c = f_g * c + i_g * g_g
            h = o_g * jnp.tanh(c)
            outs.append(h)
        layer_in = jnp.stack(outs, axis=1)
    return layer_in[:, -1, :] @ fc_w.T + fc_b


if __name__ == "__main__":
    # Small shapes consistent with the module's forward:
    #   x: (batch, seq, feature), LSTM hidden_size=32, num_layers=2, fc: hidden -> 1
    B, S, F, H, L = 2, 8, 4, 32, 2

    key = jax.random.PRNGKey(0)
    keys = jax.random.split(key, 4 + 3 * L)

    x = jax.random.normal(keys[0], (B, S, F), dtype=jnp.float32)
    # forward() draws random initial states; generate them deterministically here.
    h0 = jax.random.normal(keys[1], (L, B, H), dtype=jnp.float32)
    c0 = jax.random.normal(keys[2], (L, B, H), dtype=jnp.float32)

    scale = 1.0 / jnp.sqrt(H)
    layer_params = []
    for l in range(L):
        in_dim = F if l == 0 else H
        w_ih = scale * jax.random.normal(keys[3 + 3 * l], (in_dim, 4 * H), dtype=jnp.float32)
        w_hh = scale * jax.random.normal(keys[4 + 3 * l], (H, 4 * H), dtype=jnp.float32)
        # b = b_ih + b_hh combined, kept 2D (1, 4H) for clean VMEM broadcast.
        b = scale * jax.random.normal(keys[5 + 3 * l], (1, 4 * H), dtype=jnp.float32)
        layer_params.append((w_ih, w_hh, b))

    # fc weight stored as (1, H) row so the kernel does a VPU multiply + lane reduce.
    fc_w = scale * jax.random.normal(keys[3 + 3 * L], (1, H), dtype=jnp.float32)
    fc_b = jnp.zeros((1, 1), dtype=jnp.float32)

    out = driver_feature_model(x, h0, c0, layer_params, fc_w, fc_b)
    out = jax.block_until_ready(out)

    ref = driver_feature_model_ref(x, h0, c0, layer_params, fc_w, fc_b)
    assert out.shape == (B, 1)
    assert jnp.allclose(out, ref, atol=1e-4, rtol=1e-4), (out, ref)

    print("KERNEL_OK")
</pallas_src>

<mosaic_0001>
module attributes {stable_mosaic.version = 11 : i64} {
  func.func @kernel(%arg0: memref<64x4xf32, #tpu.memory_space<vmem>>, %arg1: memref<2x8x32xf32, #tpu.memory_space<vmem>>, %arg2: memref<2x8x32xf32, #tpu.memory_space<vmem>>, %arg3: memref<4x128xf32, #tpu.memory_space<vmem>>, %arg4: memref<32x128xf32, #tpu.memory_space<vmem>>, %arg5: memref<1x128xf32, #tpu.memory_space<vmem>>, %arg6: memref<64x128xf32, #tpu.memory_space<vmem>>, %arg7: memref<1x128xf32, #tpu.memory_space<vmem>>, %arg8: memref<1x32xf32, #tpu.memory_space<vmem>>, %arg9: memref<1x1xf32, #tpu.memory_space<vmem>>, %arg10: memref<8x1xf32, #tpu.memory_space<vmem>>) attributes {dimension_semantics = [], scalar_prefetch = 0 : i64, scratch_operands = 0 : i64, tpu.core_type = #tpu.core_type<tc>} {
    %0 = tpu.iota {dimensions = array<i32: 1>} : vector<8x128xi32>
    %c64_i32 = arith.constant 64 : i32
    %1 = vector.broadcast %c64_i32 : i32 to vector<8x128xi32>
    %2 = arith.cmpi sge, %0, %1 : vector<8x128xi32>
    %c96_i32 = arith.constant 96 : i32
    %3 = vector.broadcast %c96_i32 : i32 to vector<8x128xi32>
    %4 = arith.cmpi slt, %0, %3 : vector<8x128xi32>
    %5 = arith.andi %2, %4 : vector<8x128xi1>
    %c0 = arith.constant 0 : index
    %c0_0 = arith.constant 0 : index
    %6 = vector.load %arg0[%c0, %c0_0] : memref<64x4xf32, #tpu.memory_space<vmem>>, vector<64x4xf32>
    %c0_1 = arith.constant 0 : index
    %c0_2 = arith.constant 0 : index
    %7 = vector.load %arg3[%c0_1, %c0_2] : memref<4x128xf32, #tpu.memory_space<vmem>>, vector<4x128xf32>
    %cst = arith.constant dense<0.000000e+00> : vector<64x128xf32>
    %8 = tpu.matmul %6, %7, %cst {dimension_numbers = #tpu.dot_dimension_numbers<[1], [0], [0], [1], [0, 0, 1, 1], [], []>} : vector<64x4xf32>, vector<4x128xf32>, vector<64x128xf32> -> vector<64x128xf32>
    %c0_3 = arith.constant 0 : index
    %c0_4 = arith.constant 0 : index
    %9 = vector.load %arg5[%c0_3, %c0_4] : memref<1x128xf32, #tpu.memory_space<vmem>>, vector<1x128xf32>
    %10 = vector.broadcast %9 : vector<1x128xf32> to vector<64x128xf32>
    %11 = arith.addf %8, %10 : vector<64x128xf32>
    %c0_5 = arith.constant 0 : index
    %c0_6 = arith.constant 0 : index
    %12 = vector.load %arg4[%c0_5, %c0_6] : memref<32x128xf32, #tpu.memory_space<vmem>>, vector<32x128xf32>
    %c0_7 = arith.constant 0 : index
    %c0_8 = arith.constant 0 : index
    %13 = vector.load %arg6[%c0_7, %c0_8] : memref<64x128xf32, #tpu.memory_space<vmem>>, vector<64x128xf32>
    %c0_9 = arith.constant 0 : index
    %c0_10 = arith.constant 0 : index
    %14 = vector.load %arg7[%c0_9, %c0_10] : memref<1x128xf32, #tpu.memory_space<vmem>>, vector<1x128xf32>
    %c0_11 = arith.constant 0 : index
    %c0_12 = arith.constant 0 : index
    %c0_13 = arith.constant 0 : index
    %15 = vector.load %arg1[%c0_11, %c0_12, %c0_13] : memref<2x8x32xf32, #tpu.memory_space<vmem>>, vector<1x8x32xf32>
    %16 = vector.shape_cast %15 : vector<1x8x32xf32> to vector<8x32xf32>
    %c1 = arith.constant 1 : index
    %c0_14 = arith.constant 0 : index
    %c0_15 = arith.constant 0 : index
    %17 = vector.load %arg1[%c1, %c0_14, %c0_15] : memref<2x8x32xf32, #tpu.memory_space<vmem>>, vector<1x8x32xf32>
    %18 = vector.shape_cast %17 : vector<1x8x32xf32> to vector<8x32xf32>
    %c0_16 = arith.constant 0 : index
    %c0_17 = arith.constant 0 : index
    %c0_18 = arith.constant 0 : index
    %19 = vector.load %arg2[%c0_16, %c0_17, %c0_18] : memref<2x8x32xf32, #tpu.memory_space<vmem>>, vector<1x8x32xf32>
    %20 = vector.shape_cast %19 : vector<1x8x32xf32> to vector<8x32xf32>
    %c1_19 = arith.constant 1 : index
    %c0_20 = arith.constant 0 : index
    %c0_21 = arith.constant 0 : index
    %21 = vector.load %arg2[%c1_19, %c0_20, %c0_21] : memref<2x8x32xf32, #tpu.memory_space<vmem>>, vector<1x8x32xf32>
    %22 = vector.shape_cast %21 : vector<1x8x32xf32> to vector<8x32xf32>
    %23 = vector.extract_strided_slice %11 {offsets = [0, 0], sizes = [8, 128], strides = [1, 1]} : vector<64x128xf32> to vector<8x128xf32>
    %cst_22 = arith.constant dense<0.000000e+00> : vector<8x128xf32>
    %24 = tpu.matmul %16, %12, %cst_22 {dimension_numbers = #tpu.dot_dimension_numbers<[1], [0], [0], [1], [0, 0, 1, 1], [], []>} : vector<8x32xf32>, vector<32x128xf32>, vector<8x128xf32> -> vector<8x128xf32>
    %25 = arith.addf %23, %24 : vector<8x128xf32>
    %cst_23 = arith.constant 2.000000e+00 : f32
    %26 = vector.broadcast %cst_23 : f32 to vector<8x128xf32>
    %27 = arith.mulf %26, %25 : vector<8x128xf32>
    %28 = arith.select %5, %27, %25 : vector<8x128xi1>, vector<8x128xf32>
    %29 = arith.negf %28 : vector<8x128xf32>
    %30 = math.exp %29 : vector<8x128xf32>
    %cst_24 = arith.constant 1.000000e+00 : f32
    %31 = vector.broadcast %cst_24 : f32 to vector<8x128xf32>
    %32 = arith.addf %31, %30 : vector<8x128xf32>
    %33 = arith.divf %31, %32 : vector<8x128xf32>
    %cst_25 = arith.constant 2.000000e+00 : f32
    %34 = vector.broadcast %cst_25 : f32 to vector<8x128xf32>
    %35 = arith.mulf %34, %33 : vector<8x128xf32>
    %cst_26 = arith.constant 1.000000e+00 : f32
    %36 = vector.broadcast %cst_26 : f32 to vector<8x128xf32>
    %37 = arith.subf %35, %36 : vector<8x128xf32>
    %38 = arith.select %5, %37, %33 : vector<8x128xi1>, vector<8x128xf32>
    %c64_i32_27 = arith.constant 64 : i32
    %39 = tpu.dynamic_rotate %38 by %c64_i32_27 dim 1 : vector<8x128xf32>, i32 -> vector<8x128xf32>
    %40 = arith.mulf %38, %39 : vector<8x128xf32>
    %41 = vector.extract_strided_slice %40 {offsets = [0, 0], sizes = [8, 32], strides = [1, 1]} : vector<8x128xf32> to vector<8x32xf32>
    %42 = vector.extract_strided_slice %38 {offsets = [0, 32], sizes = [8, 32], strides = [1, 1]} : vector<8x128xf32> to vector<8x32xf32>
    %43 = vector.extract_strided_slice %38 {offsets = [0, 96], sizes = [8, 32], strides = [1, 1]} : vector<8x128xf32> to vector<8x32xf32>
    %44 = arith.mulf %42, %20 : vector<8x32xf32>
    %45 = arith.addf %44, %41 : vector<8x32xf32>
    %46 = math.tanh %45 : vector<8x32xf32>
    %47 = arith.mulf %43, %46 : vector<8x32xf32>
    %48 = tpu.concatenate %47, %18 in 1 : vector<8x32xf32>, vector<8x32xf32> -> vector<8x64xf32>
    %cst_28 = arith.constant dense<0.000000e+00> : vector<8x128xf32>
    %49 = tpu.matmul %48, %13, %cst_28 {dimension_numbers = #tpu.dot_dimension_numbers<[1], [0], [0], [1], [0, 0, 1, 1], [], []>} : vector<8x64xf32>, vector<64x128xf32>, vector<8x128xf32> -> vector<8x128xf32>
    %50 = vector.broadcast %14 : vector<1x128xf32> to vector<8x128xf32>
    %51 = arith.addf %49, %50 : vector<8x128xf32>
    %cst_29 = arith.constant 2.000000e+00 : f32
    %52 = vector.broadcast %cst_29 : f32 to vector<8x128xf32>
    %53 = arith.mulf %52, %51 : vector<8x128xf32>
    %54 = arith.select %5, %53, %51 : vector<8x128xi1>, vector<8x128xf32>
    %55 = arith.negf %54 : vector<8x128xf32>
    %56 = math.exp %55 : vector<8x128xf32>
    %cst_30 = arith.constant 1.000000e+00 : f32
    %57 = vector.broadcast %cst_30 : f32 to vector<8x128xf32>
    %58 = arith.addf %57, %56 : vector<8x128xf32>
    %59 = arith.divf %57, %58 : vector<8x128xf32>
    %cst_31 = arith.constant 2.000000e+00 : f32
    %60 = vector.broadcast %cst_31 : f32 to vector<8x128xf32>
    %61 = arith.mulf %60, %59 : vector<8x128xf32>
    %cst_32 = arith.constant 1.000000e+00 : f32
    %62 = vector.broadcast %cst_32 : f32 to vector<8x128xf32>
    %63 = arith.subf %61, %62 : vector<8x128xf32>
    %64 = arith.select %5, %63, %59 : vector<8x128xi1>, vector<8x128xf32>
    %c64_i32_33 = arith.constant 64 : i32
    %65 = tpu.dynamic_rotate %64 by %c64_i32_33 dim 1 : vector<8x128xf32>, i32 -> vector<8x128xf32>
    %66 = arith.mulf %64, %65 : vector<8x128xf32>
    %67 = vector.extract_strided_slice %66 {offsets = [0, 0], sizes = [8, 32], strides = [1, 1]} : vector<8x128xf32> to vector<8x32xf32>
    %68 = vector.extract_strided_slice %64 {offsets = [0, 32], sizes = [8, 32], strides = [1, 1]} : vector<8x128xf32> to vector<8x32xf32>
    %69 = vector.extract_strided_slice %64 {offsets = [0, 96], sizes = [8, 32], strides = [1, 1]} : vector<8x128xf32> to vector<8x32xf32>
    %70 = arith.mulf %68, %22 : vector<8x32xf32>
    %71 = arith.addf %70, %67 : vector<8x32xf32>
    %72 = math.tanh %71 : vector<8x32xf32>
    %73 = arith.mulf %69, %72 : vector<8x32xf32>
    %74 = vector.extract_strided_slice %11 {offsets = [8, 0], sizes = [8, 128], strides = [1, 1]} : vector<64x128xf32> to vector<8x128xf32>
    %cst_34 = arith.constant dense<0.000000e+00> : vector<8x128xf32>
    %75 = tpu.matmul %47, %12, %cst_34 {dimension_numbers = #tpu.dot_dimension_numbers<[1], [0], [0], [1], [0, 0, 1, 1], [], []>} : vector<8x32xf32>, vector<32x128xf32>, vector<8x128xf32> -> vector<8x128xf32>
    %76 = arith.addf %74, %75 : vector<8x128xf32>
    %cst_35 = arith.constant 2.000000e+00 : f32
    %77 = vector.broadcast %cst_35 : f32 to vector<8x128xf32>
    %78 = arith.mulf %77, %76 : vector<8x128xf32>
    %79 = arith.select %5, %78, %76 : vector<8x128xi1>, vector<8x128xf32>
    %80 = arith.negf %79 : vector<8x128xf32>
    %81 = math.exp %80 : vector<8x128xf32>
    %cst_36 = arith.constant 1.000000e+00 : f32
    %82 = vector.broadcast %cst_36 : f32 to vector<8x128xf32>
    %83 = arith.addf %82, %81 : vector<8x128xf32>
    %84 = arith.divf %82, %83 : vector<8x128xf32>
    %cst_37 = arith.constant 2.000000e+00 : f32
    %85 = vector.broadcast %cst_37 : f32 to vector<8x128xf32>
    %86 = arith.mulf %85, %84 : vector<8x128xf32>
    %cst_38 = arith.constant 1.000000e+00 : f32
    %87 = vector.broadcast %cst_38 : f32 to vector<8x128xf32>
    %88 = arith.subf %86, %87 : vector<8x128xf32>
    %89 = arith.select %5, %88, %84 : vector<8x128xi1>, vector<8x128xf32>
    %c64_i32_39 = arith.constant 64 : i32
    %90 = tpu.dynamic_rotate %89 by %c64_i32_39 dim 1 : vector<8x128xf32>, i32 -> vector<8x128xf32>
    %91 = arith.mulf %89, %90 : vector<8x128xf32>
    %92 = vector.extract_strided_slice %91 {offsets = [0, 0], sizes = [8, 32], strides = [1, 1]} : vector<8x128xf32> to vector<8x32xf32>
    %93 = vector.extract_strided_slice %89 {offsets = [0, 32], sizes = [8, 32], strides = [1, 1]} : vector<8x128xf32> to vector<8x32xf32>
    %94 = vector.extract_strided_slice %89 {offsets = [0, 96], sizes = [8, 32], strides = [1, 1]} : vector<8x128xf32> to vector<8x32xf32>
    %95 = arith.mulf %93, %45 : vector<8x32xf32>
    %96 = arith.addf %95, %92 : vector<8x32xf32>
    %97 = math.tanh %96 : vector<8x32xf32>
    %98 = arith.mulf %94, %97 : vector<8x32xf32>
    %99 = tpu.concatenate %98, %73 in 1 : vector<8x32xf32>, vector<8x32xf32> -> vector<8x64xf32>
    %cst_40 = arith.constant dense<0.000000e+00> : vector<8x128xf32>
    %100 = tpu.matmul %99, %13, %cst_40 {dimension_numbers = #tpu.dot_dimension_numbers<[1], [0], [0], [1], [0, 0, 1, 1], [], []>} : vector<8x64xf32>, vector<64x128xf32>, vector<8x128xf32> -> vector<8x128xf32>
    %101 = vector.broadcast %14 : vector<1x128xf32> to vector<8x128xf32>
    %102 = arith.addf %100, %101 : vector<8x128xf32>
    %cst_41 = arith.constant 2.000000e+00 : f32
    %103 = vector.broadcast %cst_41 : f32 to vector<8x128xf32>
    %104 = arith.mulf %103, %102 : vector<8x128xf32>
    %105 = arith.select %5, %104, %102 : vector<8x128xi1>, vector<8x128xf32>
    %106 = arith.negf %105 : vector<8x128xf32>
    %107 = math.exp %106 : vector<8x128xf32>
    %cst_42 = arith.constant 1.000000e+00 : f32
    %108 = vector.broadcast %cst_42 : f32 to vector<8x128xf32>
    %109 = arith.addf %108, %107 : vector<8x128xf32>
    %110 = arith.divf %108, %109 : vector<8x128xf32>
    %cst_43 = arith.constant 2.000000e+00 : f32
    %111 = vector.broadcast %cst_43 : f32 to vector<8x128xf32>
    %112 = arith.mulf %111, %110 : vector<8x128xf32>
    %cst_44 = arith.constant 1.000000e+00 : f32
    %113 = vector.broadcast %cst_44 : f32 to vector<8x128xf32>
    %114 = arith.subf %112, %113 : vector<8x128xf32>
    %115 = arith.select %5, %114, %110 : vector<8x128xi1>, vector<8x128xf32>
    %c64_i32_45 = arith.constant 64 : i32
    %116 = tpu.dynamic_rotate %115 by %c64_i32_45 dim 1 : vector<8x128xf32>, i32 -> vector<8x128xf32>
    %117 = arith.mulf %115, %116 : vector<8x128xf32>
    %118 = vector.extract_strided_slice %117 {offsets = [0, 0], sizes = [8, 32], strides = [1, 1]} : vector<8x128xf32> to vector<8x32xf32>
    %119 = vector.extract_strided_slice %115 {offsets = [0, 32], sizes = [8, 32], strides = [1, 1]} : vector<8x128xf32> to vector<8x32xf32>
    %120 = vector.extract_strided_slice %115 {offsets = [0, 96], sizes = [8, 32], strides = [1, 1]} : vector<8x128xf32> to vector<8x32xf32>
    %121 = arith.mulf %119, %71 : vector<8x32xf32>
    %122 = arith.addf %121, %118 : vector<8x32xf32>
    %123 = math.tanh %122 : vector<8x32xf32>
    %124 = arith.mulf %120, %123 : vector<8x32xf32>
    %125 = vector.extract_strided_slice %11 {offsets = [16, 0], sizes = [8, 128], strides = [1, 1]} : vector<64x128xf32> to vector<8x128xf32>
    %cst_46 = arith.constant dense<0.000000e+00> : vector<8x128xf32>
    %126 = tpu.matmul %98, %12, %cst_46 {dimension_numbers = #tpu.dot_dimension_numbers<[1], [0], [0], [1], [0, 0, 1, 1], [], []>} : vector<8x32xf32>, vector<32x128xf32>, vector<8x128xf32> -> vector<8x128xf32>
    %127 = arith.addf %125, %126 : vector<8x128xf32>
    %cst_47 = arith.constant 2.000000e+00 : f32
    %128 = vector.broadcast %cst_47 : f32 to vector<8x128xf32>
    %129 = arith.mulf %128, %127 : vector<8x128xf32>
    %130 = arith.select %5, %129, %127 : vector<8x128xi1>, vector<8x128xf32>
    %131 = arith.negf %130 : vector<8x128xf32>
    %132 = math.exp %131 : vector<8x128xf32>
    %cst_48 = arith.constant 1.000000e+00 : f32
    %133 = vector.broadcast %cst_48 : f32 to vector<8x128xf32>
    %134 = arith.addf %133, %132 : vector<8x128xf32>
    %135 = arith.divf %133, %134 : vector<8x128xf32>
    %cst_49 = arith.constant 2.000000e+00 : f32
    %136 = vector.broadcast %cst_49 : f32 to vector<8x128xf32>
    %137 = arith.mulf %136, %135 : vector<8x128xf32>
    %cst_50 = arith.constant 1.000000e+00 : f32
    %138 = vector.broadcast %cst_50 : f32 to vector<8x128xf32>
    %139 = arith.subf %137, %138 : vector<8x128xf32>
    %140 = arith.select %5, %139, %135 : vector<8x128xi1>, vector<8x128xf32>
    %c64_i32_51 = arith.constant 64 : i32
    %141 = tpu.dynamic_rotate %140 by %c64_i32_51 dim 1 : vector<8x128xf32>, i32 -> vector<8x128xf32>
    %142 = arith.mulf %140, %141 : vector<8x128xf32>
    %143 = vector.extract_strided_slice %142 {offsets = [0, 0], sizes = [8, 32], strides = [1, 1]} : vector<8x128xf32> to vector<8x32xf32>
    %144 = vector.extract_strided_slice %140 {offsets = [0, 32], sizes = [8, 32], strides = [1, 1]} : vector<8x128xf32> to vector<8x32xf32>
    %145 = vector.extract_strided_slice %140 {offsets = [0, 96], sizes = [8, 32], strides = [1, 1]} : vector<8x128xf32> to vector<8x32xf32>
    %146 = arith.mulf %144, %96 : vector<8x32xf32>
    %147 = arith.addf %146, %143 : vector<8x32xf32>
    %148 = math.tanh %147 : vector<8x32xf32>
    %149 = arith.mulf %145, %148 : vector<8x32xf32>
    %150 = tpu.concatenate %149, %124 in 1 : vector<8x32xf32>, vector<8x32xf32> -> vector<8x64xf32>
    %cst_52 = arith.constant dense<0.000000e+00> : vector<8x128xf32>
    %151 = tpu.matmul %150, %13, %cst_52 {dimension_numbers = #tpu.dot_dimension_numbers<[1], [0], [0], [1], [0, 0, 1, 1], [], []>} : vector<8x64xf32>, vector<64x128xf32>, vector<8x128xf32> -> vector<8x128xf32>
    %152 = vector.broadcast %14 : vector<1x128xf32> to vector<8x128xf32>
    %153 = arith.addf %151, %152 : vector<8x128xf32>
    %cst_53 = arith.constant 2.000000e+00 : f32
    %154 = vector.broadcast %cst_53 : f32 to vector<8x128xf32>
    %155 = arith.mulf %154, %153 : vector<8x128xf32>
    %156 = arith.select %5, %155, %153 : vector<8x128xi1>, vector<8x128xf32>
    %157 = arith.negf %156 : vector<8x128xf32>
    %158 = math.exp %157 : vector<8x128xf32>
    %cst_54 = arith.constant 1.000000e+00 : f32
    %159 = vector.broadcast %cst_54 : f32 to vector<8x128xf32>
    %160 = arith.addf %159, %158 : vector<8x128xf32>
    %161 = arith.divf %159, %160 : vector<8x128xf32>
    %cst_55 = arith.constant 2.000000e+00 : f32
    %162 = vector.broadcast %cst_55 : f32 to vector<8x128xf32>
    %163 = arith.mulf %162, %161 : vector<8x128xf32>
    %cst_56 = arith.constant 1.000000e+00 : f32
    %164 = vector.broadcast %cst_56 : f32 to vector<8x128xf32>
    %165 = arith.subf %163, %164 : vector<8x128xf32>
    %166 = arith.select %5, %165, %161 : vector<8x128xi1>, vector<8x128xf32>
    %c64_i32_57 = arith.constant 64 : i32
    %167 = tpu.dynamic_rotate %166 by %c64_i32_57 dim 1 : vector<8x128xf32>, i32 -> vector<8x128xf32>
    %168 = arith.mulf %166, %167 : vector<8x128xf32>
    %169 = vector.extract_strided_slice %168 {offsets = [0, 0], sizes = [8, 32], strides = [1, 1]} : vector<8x128xf32> to vector<8x32xf32>
    %170 = vector.extract_strided_slice %166 {offsets = [0, 32], sizes = [8, 32], strides = [1, 1]} : vector<8x128xf32> to vector<8x32xf32>
    %171 = vector.extract_strided_slice %166 {offsets = [0, 96], sizes = [8, 32], strides = [1, 1]} : vector<8x128xf32> to vector<8x32xf32>
    %172 = arith.mulf %170, %122 : vector<8x32xf32>
    %173 = arith.addf %172, %169 : vector<8x32xf32>
    %174 = math.tanh %173 : vector<8x32xf32>
    %175 = arith.mulf %171, %174 : vector<8x32xf32>
    %176 = vector.extract_strided_slice %11 {offsets = [24, 0], sizes = [8, 128], strides = [1, 1]} : vector<64x128xf32> to vector<8x128xf32>
    %cst_58 = arith.constant dense<0.000000e+00> : vector<8x128xf32>
    %177 = tpu.matmul %149, %12, %cst_58 {dimension_numbers = #tpu.dot_dimension_numbers<[1], [0], [0], [1], [0, 0, 1, 1], [], []>} : vector<8x32xf32>, vector<32x128xf32>, vector<8x128xf32> -> vector<8x128xf32>
    %178 = arith.addf %176, %177 : vector<8x128xf32>
    %cst_59 = arith.constant 2.000000e+00 : f32
    %179 = vector.broadcast %cst_59 : f32 to vector<8x128xf32>
    %180 = arith.mulf %179, %178 : vector<8x128xf32>
    %181 = arith.select %5, %180, %178 : vector<8x128xi1>, vector<8x128xf32>
    %182 = arith.negf %181 : vector<8x128xf32>
    %183 = math.exp %182 : vector<8x128xf32>
    %cst_60 = arith.constant 1.000000e+00 : f32
    %184 = vector.broadcast %cst_60 : f32 to vector<8x128xf32>
    %185 = arith.addf %184, %183 : vector<8x128xf32>
    %186 = arith.divf %184, %185 : vector<8x128xf32>
    %cst_61 = arith.constant 2.000000e+00 : f32
    %187 = vector.broadcast %cst_61 : f32 to vector<8x128xf32>
    %188 = arith.mulf %187, %186 : vector<8x128xf32>
    %cst_62 = arith.constant 1.000000e+00 : f32
    %189 = vector.broadcast %cst_62 : f32 to vector<8x128xf32>
    %190 = arith.subf %188, %189 : vector<8x128xf32>
    %191 = arith.select %5, %190, %186 : vector<8x128xi1>, vector<8x128xf32>
    %c64_i32_63 = arith.constant 64 : i32
    %192 = tpu.dynamic_rotate %191 by %c64_i32_63 dim 1 : vector<8x128xf32>, i32 -> vector<8x128xf32>
    %193 = arith.mulf %191, %192 : vector<8x128xf32>
    %194 = vector.extract_strided_slice %193 {offsets = [0, 0], sizes = [8, 32], strides = [1, 1]} : vector<8x128xf32> to vector<8x32xf32>
    %195 = vector.extract_strided_slice %191 {offsets = [0, 32], sizes = [8, 32], strides = [1, 1]} : vector<8x128xf32> to vector<8x32xf32>
    %196 = vector.extract_strided_slice %191 {offsets = [0, 96], sizes = [8, 32], strides = [1, 1]} : vector<8x128xf32> to vector<8x32xf32>
    %197 = arith.mulf %195, %147 : vector<8x32xf32>
    %198 = arith.addf %197, %194 : vector<8x32xf32>
    %199 = math.tanh %198 : vector<8x32xf32>
    %200 = arith.mulf %196, %199 : vector<8x32xf32>
    %201 = tpu.concatenate %200, %175 in 1 : vector<8x32xf32>, vector<8x32xf32> -> vector<8x64xf32>
    %cst_64 = arith.constant dense<0.000000e+00> : vector<8x128xf32>
    %202 = tpu.matmul %201, %13, %cst_64 {dimension_numbers = #tpu.dot_dimension_numbers<[1], [0], [0], [1], [0, 0, 1, 1], [], []>} : vector<8x64xf32>, vector<64x128xf32>, vector<8x128xf32> -> vector<8x128xf32>
    %203 = vector.broadcast %14 : vector<1x128xf32> to vector<8x128xf32>
    %204 = arith.addf %202, %203 : vector<8x128xf32>
    %cst_65 = arith.constant 2.000000e+00 : f32
    %205 = vector.broadcast %cst_65 : f32 to vector<8x128xf32>
    %206 = arith.mulf %205, %204 : vector<8x128xf32>
    %207 = arith.select %5, %206, %204 : vector<8x128xi1>, vector<8x128xf32>
    %208 = arith.negf %207 : vector<8x128xf32>
    %209 = math.exp %208 : vector<8x128xf32>
    %cst_66 = arith.constant 1.000000e+00 : f32
    %210 = vector.broadcast %cst_66 : f32 to vector<8x128xf32>
    %211 = arith.addf %210, %209 : vector<8x128xf32>
    %212 = arith.divf %210, %211 : vector<8x128xf32>
    %cst_67 = arith.constant 2.000000e+00 : f32
    %213 = vector.broadcast %cst_67 : f32 to vector<8x128xf32>
    %214 = arith.mulf %213, %212 : vector<8x128xf32>
    %cst_68 = arith.constant 1.000000e+00 : f32
    %215 = vector.broadcast %cst_68 : f32 to vector<8x128xf32>
    %216 = arith.subf %214, %215 : vector<8x128xf32>
    %217 = arith.select %5, %216, %212 : vector<8x128xi1>, vector<8x128xf32>
    %c64_i32_69 = arith.constant 64 : i32
    %218 = tpu.dynamic_rotate %217 by %c64_i32_69 dim 1 : vector<8x128xf32>, i32 -> vector<8x128xf32>
    %219 = arith.mulf %217, %218 : vector<8x128xf32>
    %220 = vector.extract_strided_slice %219 {offsets = [0, 0], sizes = [8, 32], strides = [1, 1]} : vector<8x128xf32> to vector<8x32xf32>
    %221 = vector.extract_strided_slice %217 {offsets = [0, 32], sizes = [8, 32], strides = [1, 1]} : vector<8x128xf32> to vector<8x32xf32>
    %222 = vector.extract_strided_slice %217 {offsets = [0, 96], sizes = [8, 32], strides = [1, 1]} : vector<8x128xf32> to vector<8x32xf32>
    %223 = arith.mulf %221, %173 : vector<8x32xf32>
    %224 = arith.addf %223, %220 : vector<8x32xf32>
    %225 = math.tanh %224 : vector<8x32xf32>
    %226 = arith.mulf %222, %225 : vector<8x32xf32>
    %227 = vector.extract_strided_slice %11 {offsets = [32, 0], sizes = [8, 128], strides = [1, 1]} : vector<64x128xf32> to vector<8x128xf32>
    %cst_70 = arith.constant dense<0.000000e+00> : vector<8x128xf32>
    %228 = tpu.matmul %200, %12, %cst_70 {dimension_numbers = #tpu.dot_dimension_numbers<[1], [0], [0], [1], [0, 0, 1, 1], [], []>} : vector<8x32xf32>, vector<32x128xf32>, vector<8x128xf32> -> vector<8x128xf32>
    %229 = arith.addf %227, %228 : vector<8x128xf32>
    %cst_71 = arith.constant 2.000000e+00 : f32
    %230 = vector.broadcast %cst_71 : f32 to vector<8x128xf32>
    %231 = arith.mulf %230, %229 : vector<8x128xf32>
    %232 = arith.select %5, %231, %229 : vector<8x128xi1>, vector<8x128xf32>
    %233 = arith.negf %232 : vector<8x128xf32>
    %234 = math.exp %233 : vector<8x128xf32>
    %cst_72 = arith.constant 1.000000e+00 : f32
    %235 = vector.broadcast %cst_72 : f32 to vector<8x128xf32>
    %236 = arith.addf %235, %234 : vector<8x128xf32>
    %237 = arith.divf %235, %236 : vector<8x128xf32>
    %cst_73 = arith.constant 2.000000e+00 : f32
    %238 = vector.broadcast %cst_73 : f32 to vector<8x128xf32>
    %239 = arith.mulf %238, %237 : vector<8x128xf32>
    %cst_74 = arith.constant 1.000000e+00 : f32
    %240 = vector.broadcast %cst_74 : f32 to vector<8x128xf32>
    %241 = arith.subf %239, %240 : vector<8x128xf32>
    %242 = arith.select %5, %241, %237 : vector<8x128xi1>, vector<8x128xf32>
    %c64_i32_75 = arith.constant 64 : i32
    %243 = tpu.dynamic_rotate %242 by %c64_i32_75 dim 1 : vector<8x128xf32>, i32 -> vector<8x128xf32>
    %244 = arith.mulf %242, %243 : vector<8x128xf32>
    %245 = vector.extract_strided_slice %244 {offsets = [0, 0], sizes = [8, 32], strides = [1, 1]} : vector<8x128xf32> to vector<8x32xf32>
    %246 = vector.extract_strided_slice %242 {offsets = [0, 32], sizes = [8, 32], strides = [1, 1]} : vector<8x128xf32> to vector<8x32xf32>
    %247 = vector.extract_strided_slice %242 {offsets = [0, 96], sizes = [8, 32], strides = [1, 1]} : vector<8x128xf32> to vector<8x32xf32>
    %248 = arith.mulf %246, %198 : vector<8x32xf32>
    %249 = arith.addf %248, %245 : vector<8x32xf32>
    %250 = math.tanh %249 : vector<8x32xf32>
    %251 = arith.mulf %247, %250 : vector<8x32xf32>
    %252 = tpu.concatenate %251, %226 in 1 : vector<8x32xf32>, vector<8x32xf32> -> vector<8x64xf32>
    %cst_76 = arith.constant dense<0.000000e+00> : vector<8x128xf32>
    %253 = tpu.matmul %252, %13, %cst_76 {dimension_numbers = #tpu.dot_dimension_numbers<[1], [0], [0], [1], [0, 0, 1, 1], [], []>} : vector<8x64xf32>, vector<64x128xf32>, vector<8x128xf32> -> vector<8x128xf32>
    %254 = vector.broadcast %14 : vector<1x128xf32> to vector<8x128xf32>
    %255 = arith.addf %253, %254 : vector<8x128xf32>
    %cst_77 = arith.constant 2.000000e+00 : f32
    %256 = vector.broadcast %cst_77 : f32 to vector<8x128xf32>
    %257 = arith.mulf %256, %255 : vector<8x128xf32>
    %258 = arith.select %5, %257, %255 : vector<8x128xi1>, vector<8x128xf32>
    %259 = arith.negf %258 : vector<8x128xf32>
    %260 = math.exp %259 : vector<8x128xf32>
    %cst_78 = arith.constant 1.000000e+00 : f32
    %261 = vector.broadcast %cst_78 : f32 to vector<8x128xf32>
    %262 = arith.addf %261, %260 : vector<8x128xf32>
    %263 = arith.divf %261, %262 : vector<8x128xf32>
    %cst_79 = arith.constant 2.000000e+00 : f32
    %264 = vector.broadcast %cst_79 : f32 to vector<8x128xf32>
    %265 = arith.mulf %264, %263 : vector<8x128xf32>
    %cst_80 = arith.constant 1.000000e+00 : f32
    %266 = vector.broadcast %cst_80 : f32 to vector<8x128xf32>
    %267 = arith.subf %265, %266 : vector<8x128xf32>
    %268 = arith.select %5, %267, %263 : vector<8x128xi1>, vector<8x128xf32>
    %c64_i32_81 = arith.constant 64 : i32
    %269 = tpu.dynamic_rotate %268 by %c64_i32_81 dim 1 : vector<8x128xf32>, i32 -> vector<8x128xf32>
    %270 = arith.mulf %268, %269 : vector<8x128xf32>
    %271 = vector.extract_strided_slice %270 {offsets = [0, 0], sizes = [8, 32], strides = [1, 1]} : vector<8x128xf32> to vector<8x32xf32>
    %272 = vector.extract_strided_slice %268 {offsets = [0, 32], sizes = [8, 32], strides = [1, 1]} : vector<8x128xf32> to vector<8x32xf32>
    %273 = vector.extract_strided_slice %268 {offsets = [0, 96], sizes = [8, 32], strides = [1, 1]} : vector<8x128xf32> to vector<8x32xf32>
    %274 = arith.mulf %272, %224 : vector<8x32xf32>
    %275 = arith.addf %274, %271 : vector<8x32xf32>
    %276 = math.tanh %275 : vector<8x32xf32>
    %277 = arith.mulf %273, %276 : vector<8x32xf32>
    %278 = vector.extract_strided_slice %11 {offsets = [40, 0], sizes = [8, 128], strides = [1, 1]} : vector<64x128xf32> to vector<8x128xf32>
    %cst_82 = arith.constant dense<0.000000e+00> : vector<8x128xf32>
    %279 = tpu.matmul %251, %12, %cst_82 {dimension_numbers = #tpu.dot_dimension_numbers<[1], [0], [0], [1], [0, 0, 1, 1], [], []>} : vector<8x32xf32>, vector<32x128xf32>, vector<8x128xf32> -> vector<8x128xf32>
    %280 = arith.addf %278, %279 : vector<8x128xf32>
    %cst_83 = arith.constant 2.000000e+00 : f32
    %281 = vector.broadcast %cst_83 : f32 to vector<8x128xf32>
    %282 = arith.mulf %281, %280 : vector<8x128xf32>
    %283 = arith.select %5, %282, %280 : vector<8x128xi1>, vector<8x128xf32>
    %284 = arith.negf %283 : vector<8x128xf32>
    %285 = math.exp %284 : vector<8x128xf32>
    %cst_84 = arith.constant 1.000000e+00 : f32
    %286 = vector.broadcast %cst_84 : f32 to vector<8x128xf32>
    %287 = arith.addf %286, %285 : vector<8x128xf32>
    %288 = arith.divf %286, %287 : vector<8x128xf32>
    %cst_85 = arith.constant 2.000000e+00 : f32
    %289 = vector.broadcast %cst_85 : f32 to vector<8x128xf32>
    %290 = arith.mulf %289, %288 : vector<8x128xf32>
    %cst_86 = arith.constant 1.000000e+00 : f32
    %291 = vector.broadcast %cst_86 : f32 to vector<8x128xf32>
    %292 = arith.subf %290, %291 : vector<8x128xf32>
    %293 = arith.select %5, %292, %288 : vector<8x128xi1>, vector<8x128xf32>
    %c64_i32_87 = arith.constant 64 : i32
    %294 = tpu.dynamic_rotate %293 by %c64_i32_87 dim 1 : vector<8x128xf32>, i32 -> vector<8x128xf32>
    %295 = arith.mulf %293, %294 : vector<8x128xf32>
    %296 = vector.extract_strided_slice %295 {offsets = [0, 0], sizes = [8, 32], strides = [1, 1]} : vector<8x128xf32> to vector<8x32xf32>
    %297 = vector.extract_strided_slice %293 {offsets = [0, 32], sizes = [8, 32], strides = [1, 1]} : vector<8x128xf32> to vector<8x32xf32>
    %298 = vector.extract_strided_slice %293 {offsets = [0, 96], sizes = [8, 32], strides = [1, 1]} : vector<8x128xf32> to vector<8x32xf32>
    %299 = arith.mulf %297, %249 : vector<8x32xf32>
    %300 = arith.addf %299, %296 : vector<8x32xf32>
    %301 = math.tanh %300 : vector<8x32xf32>
    %302 = arith.mulf %298, %301 : vector<8x32xf32>
    %303 = tpu.concatenate %302, %277 in 1 : vector<8x32xf32>, vector<8x32xf32> -> vector<8x64xf32>
    %cst_88 = arith.constant dense<0.000000e+00> : vector<8x128xf32>
    %304 = tpu.matmul %303, %13, %cst_88 {dimension_numbers = #tpu.dot_dimension_numbers<[1], [0], [0], [1], [0, 0, 1, 1], [], []>} : vector<8x64xf32>, vector<64x128xf32>, vector<8x128xf32> -> vector<8x128xf32>
    %305 = vector.broadcast %14 : vector<1x128xf32> to vector<8x128xf32>
    %306 = arith.addf %304, %305 : vector<8x128xf32>
    %cst_89 = arith.constant 2.000000e+00 : f32
    %307 = vector.broadcast %cst_89 : f32 to vector<8x128xf32>
    %308 = arith.mulf %307, %306 : vector<8x128xf32>
    %309 = arith.select %5, %308, %306 : vector<8x128xi1>, vector<8x128xf32>
    %310 = arith.negf %309 : vector<8x128xf32>
    %311 = math.exp %310 : vector<8x128xf32>
    %cst_90 = arith.constant 1.000000e+00 : f32
    %312 = vector.broadcast %cst_90 : f32 to vector<8x128xf32>
    %313 = arith.addf %312, %311 : vector<8x128xf32>
    %314 = arith.divf %312, %313 : vector<8x128xf32>
    %cst_91 = arith.constant 2.000000e+00 : f32
    %315 = vector.broadcast %cst_91 : f32 to vector<8x128xf32>
    %316 = arith.mulf %315, %314 : vector<8x128xf32>
    %cst_92 = arith.constant 1.000000e+00 : f32
    %317 = vector.broadcast %cst_92 : f32 to vector<8x128xf32>
    %318 = arith.subf %316, %317 : vector<8x128xf32>
    %319 = arith.select %5, %318, %314 : vector<8x128xi1>, vector<8x128xf32>
    %c64_i32_93 = arith.constant 64 : i32
    %320 = tpu.dynamic_rotate %319 by %c64_i32_93 dim 1 : vector<8x128xf32>, i32 -> vector<8x128xf32>
    %321 = arith.mulf %319, %320 : vector<8x128xf32>
    %322 = vector.extract_strided_slice %321 {offsets = [0, 0], sizes = [8, 32], strides = [1, 1]} : vector<8x128xf32> to vector<8x32xf32>
    %323 = vector.extract_strided_slice %319 {offsets = [0, 32], sizes = [8, 32], strides = [1, 1]} : vector<8x128xf32> to vector<8x32xf32>
    %324 = vector.extract_strided_slice %319 {offsets = [0, 96], sizes = [8, 32], strides = [1, 1]} : vector<8x128xf32> to vector<8x32xf32>
    %325 = arith.mulf %323, %275 : vector<8x32xf32>
    %326 = arith.addf %325, %322 : vector<8x32xf32>
    %327 = math.tanh %326 : vector<8x32xf32>
    %328 = arith.mulf %324, %327 : vector<8x32xf32>
    %329 = vector.extract_strided_slice %11 {offsets = [48, 0], sizes = [8, 128], strides = [1, 1]} : vector<64x128xf32> to vector<8x128xf32>
    %cst_94 = arith.constant dense<0.000000e+00> : vector<8x128xf32>
    %330 = tpu.matmul %302, %12, %cst_94 {dimension_numbers = #tpu.dot_dimension_numbers<[1], [0], [0], [1], [0, 0, 1, 1], [], []>} : vector<8x32xf32>, vector<32x128xf32>, vector<8x128xf32> -> vector<8x128xf32>
    %331 = arith.addf %329, %330 : vector<8x128xf32>
    %cst_95 = arith.constant 2.000000e+00 : f32
    %332 = vector.broadcast %cst_95 : f32 to vector<8x128xf32>
    %333 = arith.mulf %332, %331 : vector<8x128xf32>
    %334 = arith.select %5, %333, %331 : vector<8x128xi1>, vector<8x128xf32>
    %335 = arith.negf %334 : vector<8x128xf32>
    %336 = math.exp %335 : vector<8x128xf32>
    %cst_96 = arith.constant 1.000000e+00 : f32
    %337 = vector.broadcast %cst_96 : f32 to vector<8x128xf32>
    %338 = arith.addf %337, %336 : vector<8x128xf32>
    %339 = arith.divf %337, %338 : vector<8x128xf32>
    %cst_97 = arith.constant 2.000000e+00 : f32
    %340 = vector.broadcast %cst_97 : f32 to vector<8x128xf32>
    %341 = arith.mulf %340, %339 : vector<8x128xf32>
    %cst_98 = arith.constant 1.000000e+00 : f32
    %342 = vector.broadcast %cst_98 : f32 to vector<8x128xf32>
    %343 = arith.subf %341, %342 : vector<8x128xf32>
    %344 = arith.select %5, %343, %339 : vector<8x128xi1>, vector<8x128xf32>
    %c64_i32_99 = arith.constant 64 : i32
    %345 = tpu.dynamic_rotate %344 by %c64_i32_99 dim 1 : vector<8x128xf32>, i32 -> vector<8x128xf32>
    %346 = arith.mulf %344, %345 : vector<8x128xf32>
    %347 = vector.extract_strided_slice %346 {offsets = [0, 0], sizes = [8, 32], strides = [1, 1]} : vector<8x128xf32> to vector<8x32xf32>
    %348 = vector.extract_strided_slice %344 {offsets = [0, 32], sizes = [8, 32], strides = [1, 1]} : vector<8x128xf32> to vector<8x32xf32>
    %349 = vector.extract_strided_slice %344 {offsets = [0, 96], sizes = [8, 32], strides = [1, 1]} : vector<8x128xf32> to vector<8x32xf32>
    %350 = arith.mulf %348, %300 : vector<8x32xf32>
    %351 = arith.addf %350, %347 : vector<8x32xf32>
    %352 = math.tanh %351 : vector<8x32xf32>
    %353 = arith.mulf %349, %352 : vector<8x32xf32>
    %354 = tpu.concatenate %353, %328 in 1 : vector<8x32xf32>, vector<8x32xf32> -> vector<8x64xf32>
    %cst_100 = arith.constant dense<0.000000e+00> : vector<8x128xf32>
    %355 = tpu.matmul %354, %13, %cst_100 {dimension_numbers = #tpu.dot_dimension_numbers<[1], [0], [0], [1], [0, 0, 1, 1], [], []>} : vector<8x64xf32>, vector<64x128xf32>, vector<8x128xf32> -> vector<8x128xf32>
    %356 = vector.broadcast %14 : vector<1x128xf32> to vector<8x128xf32>
    %357 = arith.addf %355, %356 : vector<8x128xf32>
    %cst_101 = arith.constant 2.000000e+00 : f32
    %358 = vector.broadcast %cst_101 : f32 to vector<8x128xf32>
    %359 = arith.mulf %358, %357 : vector<8x128xf32>
    %360 = arith.select %5, %359, %357 : vector<8x128xi1>, vector<8x128xf32>
    %361 = arith.negf %360 : vector<8x128xf32>
    %362 = math.exp %361 : vector<8x128xf32>
    %cst_102 = arith.constant 1.000000e+00 : f32
    %363 = vector.broadcast %cst_102 : f32 to vector<8x128xf32>
    %364 = arith.addf %363, %362 : vector<8x128xf32>
    %365 = arith.divf %363, %364 : vector<8x128xf32>
    %cst_103 = arith.constant 2.000000e+00 : f32
    %366 = vector.broadcast %cst_103 : f32 to vector<8x128xf32>
    %367 = arith.mulf %366, %365 : vector<8x128xf32>
    %cst_104 = arith.constant 1.000000e+00 : f32
    %368 = vector.broadcast %cst_104 : f32 to vector<8x128xf32>
    %369 = arith.subf %367, %368 : vector<8x128xf32>
    %370 = arith.select %5, %369, %365 : vector<8x128xi1>, vector<8x128xf32>
    %c64_i32_105 = arith.constant 64 : i32
    %371 = tpu.dynamic_rotate %370 by %c64_i32_105 dim 1 : vector<8x128xf32>, i32 -> vector<8x128xf32>
    %372 = arith.mulf %370, %371 : vector<8x128xf32>
    %373 = vector.extract_strided_slice %372 {offsets = [0, 0], sizes = [8, 32], strides = [1, 1]} : vector<8x128xf32> to vector<8x32xf32>
    %374 = vector.extract_strided_slice %370 {offsets = [0, 32], sizes = [8, 32], strides = [1, 1]} : vector<8x128xf32> to vector<8x32xf32>
    %375 = vector.extract_strided_slice %370 {offsets = [0, 96], sizes = [8, 32], strides = [1, 1]} : vector<8x128xf32> to vector<8x32xf32>
    %376 = arith.mulf %374, %326 : vector<8x32xf32>
    %377 = arith.addf %376, %373 : vector<8x32xf32>
    %378 = math.tanh %377 : vector<8x32xf32>
    %379 = arith.mulf %375, %378 : vector<8x32xf32>
    %380 = vector.extract_strided_slice %11 {offsets = [56, 0], sizes = [8, 128], strides = [1, 1]} : vector<64x128xf32> to vector<8x128xf32>
    %cst_106 = arith.constant dense<0.000000e+00> : vector<8x128xf32>
    %381 = tpu.matmul %353, %12, %cst_106 {dimension_numbers = #tpu.dot_dimension_numbers<[1], [0], [0], [1], [0, 0, 1, 1], [], []>} : vector<8x32xf32>, vector<32x128xf32>, vector<8x128xf32> -> vector<8x128xf32>
    %382 = arith.addf %380, %381 : vector<8x128xf32>
    %cst_107 = arith.constant 2.000000e+00 : f32
    %383 = vector.broadcast %cst_107 : f32 to vector<8x128xf32>
    %384 = arith.mulf %383, %382 : vector<8x128xf32>
    %385 = arith.select %5, %384, %382 : vector<8x128xi1>, vector<8x128xf32>
    %386 = arith.negf %385 : vector<8x128xf32>
    %387 = math.exp %386 : vector<8x128xf32>
    %cst_108 = arith.constant 1.000000e+00 : f32
    %388 = vector.broadcast %cst_108 : f32 to vector<8x128xf32>
    %389 = arith.addf %388, %387 : vector<8x128xf32>
    %390 = arith.divf %388, %389 : vector<8x128xf32>
    %cst_109 = arith.constant 2.000000e+00 : f32
    %391 = vector.broadcast %cst_109 : f32 to vector<8x128xf32>
    %392 = arith.mulf %391, %390 : vector<8x128xf32>
    %cst_110 = arith.constant 1.000000e+00 : f32
    %393 = vector.broadcast %cst_110 : f32 to vector<8x128xf32>
    %394 = arith.subf %392, %393 : vector<8x128xf32>
    %395 = arith.select %5, %394, %390 : vector<8x128xi1>, vector<8x128xf32>
    %c64_i32_111 = arith.constant 64 : i32
    %396 = tpu.dynamic_rotate %395 by %c64_i32_111 dim 1 : vector<8x128xf32>, i32 -> vector<8x128xf32>
    %397 = arith.mulf %395, %396 : vector<8x128xf32>
    %398 = vector.extract_strided_slice %397 {offsets = [0, 0], sizes = [8, 32], strides = [1, 1]} : vector<8x128xf32> to vector<8x32xf32>
    %399 = vector.extract_strided_slice %395 {offsets = [0, 32], sizes = [8, 32], strides = [1, 1]} : vector<8x128xf32> to vector<8x32xf32>
    %400 = vector.extract_strided_slice %395 {offsets = [0, 96], sizes = [8, 32], strides = [1, 1]} : vector<8x128xf32> to vector<8x32xf32>
    %401 = arith.mulf %399, %351 : vector<8x32xf32>
    %402 = arith.addf %401, %398 : vector<8x32xf32>
    %403 = math.tanh %402 : vector<8x32xf32>
    %404 = arith.mulf %400, %403 : vector<8x32xf32>
    %405 = tpu.concatenate %404, %379 in 1 : vector<8x32xf32>, vector<8x32xf32> -> vector<8x64xf32>
    %cst_112 = arith.constant dense<0.000000e+00> : vector<8x128xf32>
    %406 = tpu.matmul %405, %13, %cst_112 {dimension_numbers = #tpu.dot_dimension_numbers<[1], [0], [0], [1], [0, 0, 1, 1], [], []>} : vector<8x64xf32>, vector<64x128xf32>, vector<8x128xf32> -> vector<8x128xf32>
    %407 = vector.broadcast %14 : vector<1x128xf32> to vector<8x128xf32>
    %408 = arith.addf %406, %407 : vector<8x128xf32>
    %cst_113 = arith.constant 2.000000e+00 : f32
    %409 = vector.broadcast %cst_113 : f32 to vector<8x128xf32>
    %410 = arith.mulf %409, %408 : vector<8x128xf32>
    %411 = arith.select %5, %410, %408 : vector<8x128xi1>, vector<8x128xf32>
    %412 = arith.negf %411 : vector<8x128xf32>
    %413 = math.exp %412 : vector<8x128xf32>
    %cst_114 = arith.constant 1.000000e+00 : f32
    %414 = vector.broadcast %cst_114 : f32 to vector<8x128xf32>
    %415 = arith.addf %414, %413 : vector<8x128xf32>
    %416 = arith.divf %414, %415 : vector<8x128xf32>
    %cst_115 = arith.constant 2.000000e+00 : f32
    %417 = vector.broadcast %cst_115 : f32 to vector<8x128xf32>
    %418 = arith.mulf %417, %416 : vector<8x128xf32>
    %cst_116 = arith.constant 1.000000e+00 : f32
    %419 = vector.broadcast %cst_116 : f32 to vector<8x128xf32>
    %420 = arith.subf %418, %419 : vector<8x128xf32>
    %421 = arith.select %5, %420, %416 : vector<8x128xi1>, vector<8x128xf32>
    %c64_i32_117 = arith.constant 64 : i32
    %422 = tpu.dynamic_rotate %421 by %c64_i32_117 dim 1 : vector<8x128xf32>, i32 -> vector<8x128xf32>
    %423 = arith.mulf %421, %422 : vector<8x128xf32>
    %424 = vector.extract_strided_slice %423 {offsets = [0, 0], sizes = [8, 32], strides = [1, 1]} : vector<8x128xf32> to vector<8x32xf32>
    %425 = vector.extract_strided_slice %421 {offsets = [0, 32], sizes = [8, 32], strides = [1, 1]} : vector<8x128xf32> to vector<8x32xf32>
    %426 = vector.extract_strided_slice %421 {offsets = [0, 96], sizes = [8, 32], strides = [1, 1]} : vector<8x128xf32> to vector<8x32xf32>
    %427 = arith.mulf %425, %377 : vector<8x32xf32>
    %428 = arith.addf %427, %424 : vector<8x32xf32>
    %429 = math.tanh %428 : vector<8x32xf32>
    %430 = arith.mulf %426, %429 : vector<8x32xf32>
    %c0_118 = arith.constant 0 : index
    %c0_119 = arith.constant 0 : index
    %431 = vector.load %arg8[%c0_118, %c0_119] : memref<1x32xf32, #tpu.memory_space<vmem>>, vector<1x32xf32>
    %432 = vector.broadcast %431 : vector<1x32xf32> to vector<8x32xf32>
    %433 = arith.mulf %430, %432 : vector<8x32xf32>
    %cst_120 = arith.constant dense<0.000000e+00> : vector<8xf32>
    %434 = vector.multi_reduction <add>, %433, %cst_120 [1] : vector<8x32xf32> to vector<8xf32>
    %435 = vector.shape_cast %434 : vector<8xf32> to vector<8x1xf32>
    %c0_121 = arith.constant 0 : index
    %c0_122 = arith.constant 0 : index
    %436 = vector.load %arg9[%c0_121, %c0_122] : memref<1x1xf32, #tpu.memory_space<vmem>>, vector<1x1xf32>
    %437 = vector.broadcast %436 : vector<1x1xf32> to vector<8x1xf32>
    %438 = arith.addf %435, %437 : vector<8x1xf32>
    %c0_123 = arith.constant 0 : index
    %c0_124 = arith.constant 0 : index
    %439 = vector.load %arg10[%c0_123, %c0_124] : memref<8x1xf32, #tpu.memory_space<vmem>>, vector<8x1xf32>
    tpu.vector_store %arg10[%c0_123, %c0_124], %438 {strides = array<i32>} : memref<8x1xf32, #tpu.memory_space<vmem>>, vector<8x1xf32>,
    return
  }
}

</mosaic_0001>

<bundles_post_ra>
// kernel: tpu_custom_call.1
= control target key start
LH: loop header
LB: loop body
LE: loop exit
PB: predicated region body
PF: predicated region fallthrough
CT: control target
= control target key end

     0   :  { %s3245_s0 = inlined_call_operand.vmem [shape: f32[64,4], index: 0, kind: input, shape index: {}]   ;;  %s3246_s1 = inlined_call_operand.vmem [shape: f32[2,8,32], index: 1, kind: input, shape index: {}]   ;;  %s3247_s2 = inlined_call_operand.hbm [shape: f32[2,8,32], index: 2, kind: input, shape index: {}]   ;;  %s3248_s3 = inlined_call_operand.vmem [shape: f32[4,128], index: 3, kind: input, shape index: {}]   ;;  %s3249_s4 = inlined_call_operand.hbm [shape: f32[32,128], index: 4, kind: input, shape index: {}]   ;;  %s3250_s5 = inlined_call_operand.vmem [shape: f32[1,128], index: 5, kind: input, shape index: {}]   ;;  %s3251_s6 = inlined_call_operand.vmem [shape: f32[64,128], index: 6, kind: input, shape index: {}]   ;;  %s3252_s7 = inlined_call_operand.vmem [shape: f32[1,128], index: 7, kind: input, shape index: {}]   ;;  %s3253_s8 = inlined_call_operand.vmem [shape: f32[1,32], index: 8, kind: input, shape index: {}]   ;;  %s3254_s9 = inlined_call_operand.<no memory space> [shape: f32[1,1], index: 9, kind: input, shape index: {}]   ;;  %s3255_s10 = inlined_call_operand.vmem [shape: f32[8,1], index: 10, kind: output, shape index: {}]  }
   0x1   :  { %v15_v0 = vstv %s3254_s9 }
   0x2   :  { %16 = vst [vmem:[#allocation2] sm:$0x1] %v15_v0 }
   0x3   :  { %17 = vsyncpa [#allocation4], 0 }
   0x4   :  { %18 = vsyncpa [#allocation6], 0  ;;  %s2681_s15 = smov [#allocation3]   ;;  %s2633_s19 = scalar_lea.hbm %s3247_s2, 256 }
   0x5   :  { %s28_s16 = sshll.u32 %s2681_s15, 4  ;;  %p2634_p0 = scmp.ne.s32.totalorder %s3247_s2, %s2633_s19  ;;  %s29_s16 = int_to_ptr.vmem [resolvable:$true] %s28_s16 }
   0x6   :  { %p2637_p1 = scmp.lt.u32.totalorder %s2633_s19, %s3247_s2 }
   0x8   :  { %p2639_p2 = pnand %p2637_p1, %p2634_p0 }
   0xa   :  { %2642 = shalt.err (!%p2639_p2)
}
   0xb   :  { %s2643_s9 = scalar_lea.vmem %s29_s16, 256  ;;  %p2648_p4 = scmp.lt.s32.totalorder %s29_s16, %s29_s16 }
   0xc   :  { %p2644_p3 = scmp.ne.s32.totalorder %s29_s16, %s2643_s9  ;;  %p2649_p5 = scmp.lt.s32.totalorder %s2643_s9, %s2643_s9 }
   0xe   :  { %p2650_p6 = por %p2649_p5, %p2648_p4 }
  0x10   :  { %p2651_p7 = pnand %p2650_p6, %p2644_p3 }
  0x12   :  { %2654 = shalt.err (!%p2651_p7)
}
  0x13   :  { %s2682_s24 = smov 128   ;;  %s2683_s25 = smov 8  }
  0x14   :  { %34 = dma.hbm_to_vmem [thread:$0]  %s3247_s2, 256, %s29_s16, [#allocation4], %s2682_s24, %s2682_s24, %s2683_s25  }
  0x15   :  { %s2684_s28 = smov [#allocation5]   ;;  %s2655_s12 = scalar_lea.hbm %s3249_s4, 512 }
  0x16   :  { %s42_s29 = sshll.u32 %s2684_s28, 4  ;;  %p2656_p8 = scmp.ne.s32.totalorder %s3249_s4, %s2655_s12  ;;  %s43_s29 = int_to_ptr.vmem [resolvable:$true] %s42_s29 }
  0x17   :  { %p2659_p9 = scmp.lt.u32.totalorder %s2655_s12, %s3249_s4 }
  0x19   :  { %p2661_p10 = pnand %p2659_p9, %p2656_p8 }
  0x1b   :  { %2664 = shalt.err (!%p2661_p10)
}
  0x1c   :  { %s2665_s18 = scalar_lea.vmem %s43_s29, 512  ;;  %p2670_p12 = scmp.lt.s32.totalorder %s43_s29, %s43_s29 }
  0x1d   :  { %p2666_p11 = scmp.ne.s32.totalorder %s43_s29, %s2665_s18  ;;  %p2671_p13 = scmp.lt.s32.totalorder %s2665_s18, %s2665_s18 }
  0x1f   :  { %p2672_p0 = por %p2671_p13, %p2670_p12 }
  0x21   :  { %p2673_p1 = pnand %p2672_p0, %p2666_p11 }
  0x23   :  { %2676 = shalt.err (!%p2673_p1)
}
  0x24   :  { %48 = dma.hbm_to_vmem [thread:$0]  %s3249_s4, 512, %s43_s29, [#allocation6], %s2682_s24, %s2682_s24, %s2683_s25  }
  0x25   :  { %2677 = dma.done.wait [#allocation4], 256  }
  0x26   :  { %2678 = vsyncadd [#allocation4], 4294967040 }
  0x27   :  { %2679 = dma.done.wait [#allocation6], 512  }
  0x28   :  { %2680 = vsyncadd [#allocation6], 4294966784  ;;  %v2685_v1 = vmov 0.0|0.0   ;;  %vm2686_vm0 = vmmov 0   ;;  %v2687_v2 = vmov 0.0   ;;  %vm111_vm1 = vcmask 1043456  }
  0x29   :  { %2382 = vmatprep.subr.bf16.mxu1 %v2685_v1  ;;  %2150 = vmatprep.mubr.msk.f32.mxu1 %vm2686_vm0, %v2687_v2  ;;  %vm86_vm2 = vcmask 31744   ;;  %v220_v3 = vld [vmem:[#allocation5] sm:$0xff]  ;;  %v221_v4 = vld [vmem:[#allocation5 + $0x8] sm:$0xff]  ;;  %v71_v8 = vld [vmem:[%s3245_s0 + $0x8] sm:$0xff]  ;;  %vm239_vm3 = vcmask 261120   ;;  %v65_v13 = vlaneseq  ;;  %s2688_s26 = smov 64  }
  0x2a   :  { %v78_v5 = vld [vmem:[%s3248_s3] sm:$0xf]  ;;  %v2779_v6 = vpack.c.bf16 %v221_v4, %v220_v3  ;;  %v223_v10 = vld [vmem:[#allocation5 + $0x18] sm:$0xff]  ;;  %s2689_s27 = smov 32   ;;  %v73_v43 = vld [vmem:[%s3245_s0 + $0x18] sm:$0xff]  ;;  %vm359_vm7 = vcmask 523264  }
  0x2b   :  { %2128 = vmatprep.subr.msk.mxu0 %vm111_vm1, %v78_v5  ;;  %v70_v7 = vld [vmem:[%s3245_s0] sm:$0xff]  ;;  %v66_v17 = vand.u32 127, %v65_v13  ;;  %v225_v40 = vld [vmem:[%s3251_s6 + $0x8] sm:$0xff]  ;;  %v72_v41 = vld [vmem:[%s3245_s0 + $0x10] sm:$0xff]  ;;  %s2690_s18 = smov 96   ;;  %vm1937_vm8 = vcmask 7168  }
  0x2c   :  { %v222_v9 = vld [vmem:[#allocation5 + $0x10] sm:$0xff]  ;;  %2129 = vmatpush3.msk.msra.mxu0 %vm111_vm1, %v78_v5  ;;  %2130 = vmatprep.mubr.msk.f32.mxu0 %vm86_vm2, %v70_v7  ;;  %v2807_v15 = vld [vmem:[%s3250_s5] ss:$0 sm:$0xff]  ;;  %v226_v44 = vld [vmem:[%s3251_s6 + $0x10] sm:$0xff] }
  0x2d   :  { %2384 = vmatpush3.bf16.msra.mxu1 %v2779_v6  ;;  %2131 = vmatmul.mubr.msk.f32.vlgmr.msra.gmra.mrb[0].mxu0 %vm86_vm2, %v71_v8  ;;  %v2790_v11 = vpack.c.bf16 %v223_v10, %v222_v9  ;;  %v233_v12 = vld [vmem:[%s3246_s1] sm:$0xff]  ;;  %vm67_vm4 = vcmp.ge.s32.totalorder %v66_v17, 64  ;;  %vm68_vm5 = vcmp.lt.s32.totalorder %v66_v17, 96  ;;  %v227_v45 = vld [vmem:[%s3251_s6 + $0x18] sm:$0xff]  ;;  %v75_v48 = vld [vmem:[%s3245_s0 + $0x28] sm:$0xff] }
  0x2e   :  { %2385 = vmatprep.subr.bf16.mxu1 %v2685_v1  ;;  %2388 = vmatprep.subr.bf16.mxu0 %v2685_v1  ;;  %vm2810_vm6 = vmand %vm67_vm4, %vm68_vm5  ;;  %v236_v32 = vld [vmem:[#allocation3] sm:$0xff]  ;;  %v2850_v47 = vpack.c.bf16 %v227_v45, %v226_v44  ;;  %v76_v51 = vld [vmem:[%s3245_s0 + $0x30] sm:$0xff] }
  0x2f   :  { %v224_v39 = vld [vmem:[%s3251_s6] sm:$0xff]  ;;  %2133 = vmatprep.mubr.msk.f32.mxu0 %vm86_vm2, %v72_v41  ;;  %v229_v50 = vld [vmem:[%s3251_s6 + $0x28] sm:$0xff]  ;;  %v77_v53 = vld [vmem:[%s3245_s0 + $0x38] sm:$0xff] }
  0x30   :  { %v2833_v42 = vpack.c.bf16 %v225_v40, %v224_v39  ;;  %v74_v46 = vld [vmem:[%s3245_s0 + $0x20] sm:$0xff]  ;;  %v230_v54 = vld [vmem:[%s3251_s6 + $0x30] sm:$0xff]  ;;  %v231_v55 = vld [vmem:[%s3251_s6 + $0x38] sm:$0xff] }
  0x31   :  { %2387 = vmatpush3.bf16.msra.mxu1 %v2790_v11  ;;  %2134 = vmatmul.mubr.msk.f32.gmra.mrb[2].mxu0 %vm86_vm2, %v73_v43  ;;  %v228_v49 = vld [vmem:[%s3251_s6 + $0x20] sm:$0xff]  ;;  %v2888_v57 = vpack.c.bf16 %v231_v55, %v230_v54  ;;  %v1955_v58 = vld [vmem:[%s3246_s1 + $0x8] sm:$0xff] }
  0x32   :  { %2406 = vmatprep.subr.bf16.mxu1 %v2685_v1  ;;  %2390 = vmatpush3.bf16.msra.mxu0 %v2833_v42  ;;  %v2870_v52 = vpack.c.bf16 %v229_v50, %v228_v49  ;;  %v2934_v9 = vld [vmem:[%s3252_s7] ss:$0 sm:$0xff] }
  0x33   :  { %2136 = vmatprep.mubr.msk.f32.mxu0 %vm86_vm2, %v74_v46  ;;  %2391 = vmatprep.subr.bf16.mxu0 %v2685_v1 }
  0x34   :  { %2151 = vmatmul.mubr.msk.f32.vlgmr.msra.gmra.mrb[0].mxu1 %vm239_vm3, %v233_v12 }
  0x35   :  { %2199 = vmatprep.mubr.msk.f32.mxu1 %vm2686_vm0, %v2687_v2  ;;  %2408 = vmatpush3.bf16.msra.mxu1 %v2833_v42 }
  0x36   :  { %2409 = vmatprep.subr.bf16.mxu1 %v2685_v1  ;;  %2137 = vmatmul.mubr.msk.f32.gmra.mrb[4].mxu0 %vm86_vm2, %v75_v48 }
  0x37   :  { %2393 = vmatpush3.bf16.msra.mxu0 %v2850_v47  ;;  %2139 = vmatprep.mubr.msk.f32.mxu0 %vm86_vm2, %v76_v51 }
  0x38   :  { %2394 = vmatprep.subr.bf16.mxu0 %v2685_v1 }
  0x39   :  { %2411 = vmatpush3.bf16.msra.mxu1 %v2850_v47 }
  0x3a   :  { %2412 = vmatprep.subr.bf16.mxu1 %v2685_v1  ;;  %2140 = vmatmul.mubr.msk.f32.gmra.mrb[6].mxu0 %vm86_vm2, %v77_v53 }
  0x3b   :  { %2396 = vmatpush3.bf16.msra.mxu0 %v2870_v52  ;;  %2169 = vmatprep.mubr.msk.f32.mxu0 %vm2686_vm0, %v2687_v2 }
  0x3c   :  { %2397 = vmatprep.subr.bf16.mxu0 %v2685_v1 }
  0x3d   :  { %2414 = vmatpush3.bf16.msra.mxu1 %v2870_v52 }
  0x3e   :  { %2415 = vmatprep.subr.bf16.mxu1 %v2685_v1 }
  0x3f   :  { %2399 = vmatpush3.bf16.msra.mxu0 %v2888_v57 }
  0x40   :  { %2400 = vmatprep.subr.bf16.mxu0 %v2685_v1 }
  0x41   :  { %2417 = vmatpush3.bf16.msra.mxu1 %v2888_v57 }
  0x42   :  { %2436 = vmatprep.subr.bf16.mxu1 %v2685_v1 }
 0x100   :  { %v2802_v14 = vpop.f32.mrb[0].mxu0 }
 0x101   :  { %v181_v16 = vpop.f32.mrb[1].mxu0 }
 0x102   :  { %v182_v18 = vadd.f32 %v2807_v15, %v181_v16 }
 0x104   :  { %v2904_v61 = vpop.f32.mrb[2].mxu0 }
 0x105   :  { %v2906_v62 = vpop.f32.mrb[3].mxu0 }
 0x107   :  { %v309_v19 = vpop.f32.mrb[0].mxu1 }
 0x108   :  { %v313_v20 = vadd.f32 %v309_v19, %v182_v18  ;;  %v2152_v21 = vpop.f32.mrb[1].mxu1  ;;  %v187_v19 = vadd.f32 %v2802_v14, %v2807_v15 }
 0x109   :  { %v2908_v63 = vpop.f32.mrb[4].mxu0 }
 0x10a   :  { %v314_v23 = vmul.f32 2.0, %v313_v20  ;;  %v2910_v0 = vpop.f32.mrb[5].mxu0 }
 0x10c   :  { %v315_v24 = vsel %vm2810_vm6, %v314_v23, %v313_v20 }
 0x10d   :  { %v1957_v25 = vmul.f32 -1.442695, %v315_v24  ;;  %v2912_v3 = vpop.f32.mrb[6].mxu0 }
 0x10e   :  { %v2914_v4 = vpop.f32.mrb[7].mxu0 }
 0x10f   :  { %2536 = vpow2.f32 %v1957_v25 }
 0x119   :  { %v2537_v26 = vpop.eup %2536 }
 0x11a   :  { %v319_v27 = vadd.f32 1.0, %v2537_v26 }
 0x11c   :  { %2538 = vrcp.f32 %v319_v27 }
 0x126   :  { %v2539_v28 = vpop.eup %2538 }
 0x127   :  { %v322_v29 = vmul.f32 2.0, %v2539_v28 }
 0x129   :  { %v1958_v30 = vadd.f32 -1.0, %v322_v29 }
 0x12b   :  { %v324_v31 = vsel %vm2810_vm6, %v1958_v30, %v2539_v28 }
 0x12c   :  { %325 = vrot.lane.b32.xlu0 %v324_v31, %s2688_s26 }
 0x130   :  { %329 = vrot.lane.b32.xlu0 %v236_v32, %s2689_s27 }
 0x19e   :  { %v326_v33 = vpop.permute.xlu0 %325 }
 0x19f   :  { %v327_v34 = vmul.f32 %v326_v33, %v324_v31 }
 0x1a1   :  { %334 = vrot.lane.b32.xlu1 %v327_v34, %s2689_s27  ;;  %v238_v34 = vld [vmem:[#allocation3 + $0x8] sm:$0xff] }
 0x1a2   :  { %v330_v35 = vpop.permute.xlu0 %329 }
 0x1a3   :  { %v332_v36 = vmul.f32 %v330_v35, %v324_v31 }
 0x213   :  { %v335_v37 = vpop.permute.xlu1 %334 }
 0x214   :  { %v2821_v38 = vadd.f32 %v335_v37, %v332_v36 }
 0x216   :  { %2540 = vtanh.f32 %v2821_v38 }
 0x220   :  { %v2541_v56 = vpop.eup %2540 }
 0x221   :  { %340 = vrot.lane.b32.xlu1 %v2541_v56, %s2688_s26 }
 0x225   :  { %349 = vrot.lane.b32.xlu1 %v1955_v58, %s2689_s27 }
 0x293   :  { %v341_v59 = vpop.permute.xlu1 %340 }
 0x294   :  { %v343_v60 = vmul.f32 %v341_v59, %v324_v31 }
 0x296   :  { %345 = vrot.lane.b32.xlu0 %v343_v60, %s2689_s27 }
 0x297   :  { %v350_v5 = vpop.permute.xlu1 %349 }
 0x308   :  { %v346_v7 = vpop.permute.xlu0 %345 }
 0x309   :  { %v352_v8 = vsel %vm239_vm3, %v346_v7, %v350_v5 }
 0x30a   :  { %2170 = vmatmul.mubr.msk.f32.vlgmr.msra.gmra.mrb[8].mxu0 %vm359_vm7, %v352_v8  ;;  %v192_v8 = vadd.f32 %v2807_v15, %v2906_v62 }
 0x30b   :  { %2402 = vmatpush3.bf16.msra.mxu0 %v2779_v6  ;;  %2180 = vmatprep.mubr.msk.f32.mxu0 %vm2686_vm0, %v2687_v2 }
 0x30c   :  { %2403 = vmatprep.subr.bf16.mxu0 %v2685_v1 }
 0x30f   :  { %2405 = vmatpush3.bf16.msra.mxu0 %v2790_v11 }
 0x310   :  { %2418 = vmatprep.subr.bf16.mxu0 %v2685_v1 }
 0x312   :  { %2181 = vmatmul.mubr.msk.f32.vlgmr.msra.gmra.mrb[10].mxu0 %vm239_vm3, %v346_v7 }
 0x313   :  { %2420 = vmatpush3.bf16.msra.mxu0 %v2779_v6  ;;  %2210 = vmatprep.mubr.msk.f32.mxu0 %vm2686_vm0, %v2687_v2 }
 0x314   :  { %2421 = vmatprep.subr.bf16.mxu0 %v2685_v1 }
 0x317   :  { %2423 = vmatpush3.bf16.msra.mxu0 %v2790_v11 }
 0x318   :  { %2424 = vmatprep.subr.bf16.mxu0 %v2685_v1 }
 0x3dd   :  { %v429_v10 = vpop.f32.mrb[8].mxu0 }
 0x3de   :  { %v430_v12 = vadd.f32 %v2934_v9, %v429_v10  ;;  %v2171_v13 = vpop.f32.mrb[9].mxu0 }
 0x3e0   :  { %v433_v16 = vmul.f32 2.0, %v430_v12 }
 0x3e2   :  { %v434_v17 = vsel %vm2810_vm6, %v433_v16, %v430_v12 }
 0x3e3   :  { %v1961_v18 = vmul.f32 -1.442695, %v434_v17 }
 0x3e5   :  { %2542 = vpow2.f32 %v1961_v18  ;;  %v531_v20 = vpop.f32.mrb[10].mxu0 }
 0x3e6   :  { %v535_v21 = vadd.f32 %v531_v20, %v187_v19  ;;  %v2182_v23 = vpop.f32.mrb[11].mxu0 }
 0x3e8   :  { %v536_v24 = vmul.f32 2.0, %v535_v21 }
 0x3ea   :  { %v537_v25 = vsel %vm2810_vm6, %v536_v24, %v535_v21 }
 0x3eb   :  { %v1964_v26 = vmul.f32 -1.442695, %v537_v25 }
 0x3ed   :  { %2544 = vpow2.f32 %v1964_v26 }
 0x3ef   :  { %v2543_v27 = vpop.eup %2542 }
 0x3f0   :  { %v438_v28 = vadd.f32 1.0, %v2543_v27 }
 0x3f2   :  { %2546 = vrcp.f32 %v438_v28 }
 0x3f7   :  { %v2545_v29 = vpop.eup %2544 }
 0x3f8   :  { %v541_v30 = vadd.f32 1.0, %v2545_v29 }
 0x3fa   :  { %2548 = vrcp.f32 %v541_v30 }
 0x3fc   :  { %v2547_v31 = vpop.eup %2546 }
 0x3fd   :  { %v441_v32 = vmul.f32 2.0, %v2547_v31 }
 0x3ff   :  { %v1962_v33 = vadd.f32 -1.0, %v441_v32 }
 0x401   :  { %v443_v14 = vsel %vm2810_vm6, %v1962_v33, %v2547_v31 }
 0x402   :  { %444 = vrot.lane.b32.xlu0 %v443_v14, %s2688_s26 }
 0x404   :  { %v2549_v35 = vpop.eup %2548 }
 0x405   :  { %v544_v36 = vmul.f32 2.0, %v2549_v35 }
 0x406   :  { %448 = vrot.lane.b32.xlu0 %v238_v34, %s2689_s27 }
 0x407   :  { %v1965_v37 = vadd.f32 -1.0, %v544_v36 }
 0x409   :  { %v546_v39 = vsel %vm2810_vm6, %v1965_v37, %v2549_v35 }
 0x40a   :  { %547 = vrot.lane.b32.xlu1 %v546_v39, %s2688_s26  ;;  %v550_v50 = vmul.f32 %v546_v39, %v2821_v38 }
 0x474   :  { %v445_v40 = vpop.permute.xlu0 %444 }
 0x475   :  { %v446_v41 = vmul.f32 %v445_v40, %v443_v14 }
 0x477   :  { %453 = vrot.lane.b32.xlu1 %v446_v41, %s2689_s27 }
 0x478   :  { %v449_v45 = vpop.permute.xlu0 %448 }
 0x479   :  { %v451_v46 = vmul.f32 %v449_v45, %v443_v14 }
 0x47c   :  { %v548_v43 = vpop.permute.xlu1 %547 }
 0x47d   :  { %v549_v44 = vmul.f32 %v548_v43, %v546_v39 }
 0x47f   :  { %552 = vrot.lane.b32.xlu0 %v549_v44, %s2689_s27 }
 0x4e9   :  { %v454_v48 = vpop.permute.xlu1 %453 }
 0x4ea   :  { %v2952_v49 = vadd.f32 %v454_v48, %v451_v46 }
 0x4ec   :  { %2550 = vtanh.f32 %v2952_v49 }
 0x4f1   :  { %v553_v51 = vpop.permute.xlu0 %552 }
 0x4f2   :  { %v2956_v53 = vadd.f32 %v553_v51, %v550_v50 }
 0x4f4   :  { %2552 = vtanh.f32 %v2956_v53 }
 0x4f6   :  { %v2551_v54 = vpop.eup %2550 }
 0x4f7   :  { %459 = vrot.lane.b32.xlu1 %v2551_v54, %s2688_s26 }
 0x4fe   :  { %v2553_v55 = vpop.eup %2552 }
 0x4ff   :  { %558 = vrot.lane.b32.xlu0 %v2553_v55, %s2688_s26 }
 0x569   :  { %v460_v56 = vpop.permute.xlu1 %459 }
 0x56a   :  { %v462_v58 = vmul.f32 %v460_v56, %v443_v14 }
 0x56c   :  { %567 = vrot.lane.b32.xlu0 %v462_v58, %s2688_s26 }
 0x571   :  { %v559_v59 = vpop.permute.xlu0 %558 }
 0x572   :  { %v561_v60 = vmul.f32 %v559_v59, %v546_v39 }
 0x574   :  { %563 = vrot.lane.b32.xlu1 %v561_v60, %s2689_s27  ;;  %v197_v60 = vadd.f32 %v2904_v61, %v2807_v15 }
 0x5de   :  { %v568_v38 = vpop.permute.xlu0 %567 }
 0x5e6   :  { %v564_v5 = vpop.permute.xlu1 %563 }
 0x5e7   :  { %v570_v7 = vsel %vm239_vm3, %v564_v5, %v568_v38  ;;  %2211 = vmatmul.mubr.msk.f32.vlgmr.msra.gmra.mrb[12].mxu0 %vm239_vm3, %v564_v5 }
 0x5e8   :  { %2200 = vmatmul.mubr.msk.f32.vlgmr.msra.gmra.mrb[2].mxu1 %vm359_vm7, %v570_v7  ;;  %2426 = vmatpush3.bf16.msra.mxu0 %v2833_v42 }
 0x5e9   :  { %2427 = vmatprep.subr.bf16.mxu0 %v2685_v1  ;;  %2438 = vmatpush3.bf16.msra.mxu1 %v2779_v6 }
 0x5ea   :  { %2439 = vmatprep.subr.bf16.mxu1 %v2685_v1  ;;  %2240 = vmatprep.mubr.msk.f32.mxu1 %vm2686_vm0, %v2687_v2 }
 0x5eb   :  { %2229 = vmatprep.mubr.msk.f32.mxu0 %vm2686_vm0, %v2687_v2 }
 0x5ec   :  { %2429 = vmatpush3.bf16.msra.mxu0 %v2850_v47 }
 0x5ed   :  { %2430 = vmatprep.subr.bf16.mxu0 %v2685_v1  ;;  %2441 = vmatpush3.bf16.msra.mxu1 %v2790_v11 }
 0x5ee   :  { %2442 = vmatprep.subr.bf16.mxu1 %v2685_v1 }
 0x5f0   :  { %2432 = vmatpush3.bf16.msra.mxu0 %v2870_v52 }
 0x5f1   :  { %2433 = vmatprep.subr.bf16.mxu0 %v2685_v1 }
 0x5f4   :  { %2435 = vmatpush3.bf16.msra.mxu0 %v2888_v57 }
 0x5f5   :  { %2454 = vmatprep.subr.bf16.mxu0 %v2685_v1 }
 0x6ba   :  { %v738_v10 = vpop.f32.mrb[12].mxu0 }
 0x6bb   :  { %v742_v12 = vadd.f32 %v738_v10, %v192_v8  ;;  %v640_v13 = vpop.f32.mrb[2].mxu1  ;;  %v2212_v16 = vpop.f32.mrb[13].mxu0 }
 0x6bc   :  { %v641_v17 = vadd.f32 %v2934_v9, %v640_v13  ;;  %v2201_v18 = vpop.f32.mrb[3].mxu1 }
 0x6bd   :  { %v743_v19 = vmul.f32 2.0, %v742_v12 }
 0x6be   :  { %v644_v20 = vmul.f32 2.0, %v641_v17 }
 0x6bf   :  { %v744_v21 = vsel %vm2810_vm6, %v743_v19, %v742_v12 }
 0x6c0   :  { %v1970_v23 = vmul.f32 -1.442695, %v744_v21  ;;  %v645_v24 = vsel %vm2810_vm6, %v644_v20, %v641_v17 }
 0x6c1   :  { %v1967_v25 = vmul.f32 -1.442695, %v645_v24 }
 0x6c2   :  { %2554 = vpow2.f32 %v1970_v23 }
 0x6c3   :  { %2556 = vpow2.f32 %v1967_v25 }
 0x6cc   :  { %v2555_v62 = vpop.eup %2554 }
 0x6cd   :  { %v2557_v26 = vpop.eup %2556  ;;  %v748_v27 = vadd.f32 1.0, %v2555_v62 }
 0x6ce   :  { %v649_v28 = vadd.f32 1.0, %v2557_v26 }
 0x6cf   :  { %2558 = vrcp.f32 %v748_v27 }
 0x6d0   :  { %2560 = vrcp.f32 %v649_v28 }
 0x6d9   :  { %v2559_v29 = vpop.eup %2558 }
 0x6da   :  { %v2561_v30 = vpop.eup %2560  ;;  %v751_v31 = vmul.f32 2.0, %v2559_v29 }
 0x6db   :  { %v652_v32 = vmul.f32 2.0, %v2561_v30 }
 0x6dc   :  { %v1971_v33 = vadd.f32 -1.0, %v751_v31 }
 0x6dd   :  { %v1968_v14 = vadd.f32 -1.0, %v652_v32 }
 0x6de   :  { %v753_v34 = vsel %vm2810_vm6, %v1971_v33, %v2559_v29 }
 0x6df   :  { %754 = vrot.lane.b32.xlu0 %v753_v34, %s2688_s26  ;;  %v654_v35 = vsel %vm2810_vm6, %v1968_v14, %v2561_v30  ;;  %v757_v41 = vmul.f32 %v753_v34, %v2956_v53 }
 0x6e0   :  { %655 = vrot.lane.b32.xlu1 %v654_v35, %s2688_s26  ;;  %v658_v44 = vmul.f32 %v654_v35, %v2952_v49 }
 0x751   :  { %v755_v36 = vpop.permute.xlu0 %754 }
 0x752   :  { %v756_v37 = vmul.f32 %v755_v36, %v753_v34  ;;  %v656_v39 = vpop.permute.xlu1 %655 }
 0x753   :  { %v657_v40 = vmul.f32 %v656_v39, %v654_v35 }
 0x754   :  { %759 = vrot.lane.b32.xlu0 %v756_v37, %s2689_s27 }
 0x755   :  { %660 = vrot.lane.b32.xlu1 %v657_v40, %s2689_s27 }
 0x7c6   :  { %v760_v43 = vpop.permute.xlu0 %759 }
 0x7c7   :  { %v2999_v45 = vadd.f32 %v760_v43, %v757_v41  ;;  %v661_v46 = vpop.permute.xlu1 %660 }
 0x7c8   :  { %v3001_v48 = vadd.f32 %v661_v46, %v658_v44 }
 0x7c9   :  { %2562 = vtanh.f32 %v2999_v45 }
 0x7ca   :  { %2564 = vtanh.f32 %v3001_v48 }
 0x7d3   :  { %v2563_v50 = vpop.eup %2562 }
 0x7d4   :  { %v2565_v51 = vpop.eup %2564  ;;  %765 = vrot.lane.b32.xlu0 %v2563_v50, %s2688_s26 }
 0x7d5   :  { %666 = vrot.lane.b32.xlu1 %v2565_v51, %s2688_s26 }
 0x846   :  { %v766_v54 = vpop.permute.xlu0 %765 }
 0x847   :  { %v768_v53 = vmul.f32 %v766_v54, %v753_v34  ;;  %v667_v55 = vpop.permute.xlu1 %666 }
 0x848   :  { %v669_v56 = vmul.f32 %v667_v55, %v654_v35  ;;  %v202_v55 = vadd.f32 %v2807_v15, %v2910_v0 }
 0x849   :  { %770 = vrot.lane.b32.xlu1 %v768_v53, %s2689_s27 }
 0x84a   :  { %774 = vrot.lane.b32.xlu0 %v669_v56, %s2688_s26 }
 0x8bb   :  { %v771_v49 = vpop.permute.xlu1 %770 }
 0x8bc   :  { %2241 = vmatmul.mubr.msk.f32.vlgmr.msra.gmra.mrb[4].mxu1 %vm239_vm3, %v771_v49  ;;  %v775_v58 = vpop.permute.xlu0 %774 }
 0x8bd   :  { %v777_v59 = vsel %vm239_vm3, %v771_v49, %v775_v58  ;;  %2444 = vmatpush3.bf16.msra.mxu1 %v2833_v42  ;;  %2259 = vmatprep.mubr.msk.f32.mxu1 %vm2686_vm0, %v2687_v2 }
 0x8be   :  { %2230 = vmatmul.mubr.msk.f32.vlgmr.msra.gmra.mrb[14].mxu0 %vm359_vm7, %v777_v59  ;;  %2445 = vmatprep.subr.bf16.mxu1 %v2685_v1 }
 0x8bf   :  { %2456 = vmatpush3.bf16.msra.mxu0 %v2779_v6  ;;  %2270 = vmatprep.mubr.msk.f32.mxu0 %vm2686_vm0, %v2687_v2 }
 0x8c0   :  { %2457 = vmatprep.subr.bf16.mxu0 %v2685_v1 }
 0x8c1   :  { %2447 = vmatpush3.bf16.msra.mxu1 %v2850_v47 }
 0x8c2   :  { %2448 = vmatprep.subr.bf16.mxu1 %v2685_v1 }
 0x8c3   :  { %2459 = vmatpush3.bf16.msra.mxu0 %v2790_v11 }
 0x8c4   :  { %2460 = vmatprep.subr.bf16.mxu0 %v2685_v1 }
 0x8c5   :  { %2450 = vmatpush3.bf16.msra.mxu1 %v2870_v52 }
 0x8c6   :  { %2451 = vmatprep.subr.bf16.mxu1 %v2685_v1 }
 0x8c9   :  { %2453 = vmatpush3.bf16.msra.mxu1 %v2888_v57 }
 0x8ca   :  { %2472 = vmatprep.subr.bf16.mxu1 %v2685_v1 }
 0x98f   :  { %v945_v38 = vpop.f32.mrb[4].mxu1 }
 0x990   :  { %v949_v5 = vadd.f32 %v945_v38, %v197_v60  ;;  %v2242_v7 = vpop.f32.mrb[5].mxu1 }
 0x991   :  { %v847_v8 = vpop.f32.mrb[14].mxu0 }
 0x992   :  { %v950_v10 = vmul.f32 2.0, %v949_v5  ;;  %v848_v12 = vadd.f32 %v2934_v9, %v847_v8  ;;  %v2231_v13 = vpop.f32.mrb[15].mxu0 }
 0x994   :  { %v951_v16 = vsel %vm2810_vm6, %v950_v10, %v949_v5  ;;  %v851_v17 = vmul.f32 2.0, %v848_v12 }
 0x995   :  { %v1976_v18 = vmul.f32 -1.442695, %v951_v16 }
 0x996   :  { %v852_v19 = vsel %vm2810_vm6, %v851_v17, %v848_v12 }
 0x997   :  { %2566 = vpow2.f32 %v1976_v18  ;;  %v1973_v20 = vmul.f32 -1.442695, %v852_v19 }
 0x999   :  { %2568 = vpow2.f32 %v1973_v20 }
 0x9a1   :  { %v2567_v61 = vpop.eup %2566 }
 0x9a2   :  { %v955_v21 = vadd.f32 1.0, %v2567_v61 }
 0x9a3   :  { %v2569_v23 = vpop.eup %2568 }
 0x9a4   :  { %2570 = vrcp.f32 %v955_v21  ;;  %v856_v24 = vadd.f32 1.0, %v2569_v23 }
 0x9a6   :  { %2572 = vrcp.f32 %v856_v24 }
 0x9ae   :  { %v2571_v25 = vpop.eup %2570 }
 0x9af   :  { %v958_v62 = vmul.f32 2.0, %v2571_v25 }
 0x9b0   :  { %v2573_v26 = vpop.eup %2572 }
 0x9b1   :  { %v1977_v27 = vadd.f32 -1.0, %v958_v62  ;;  %v859_v28 = vmul.f32 2.0, %v2573_v26 }
 0x9b3   :  { %v960_v29 = vsel %vm2810_vm6, %v1977_v27, %v2571_v25  ;;  %v1974_v30 = vadd.f32 -1.0, %v859_v28 }
 0x9b4   :  { %961 = vrot.lane.b32.xlu0 %v960_v29, %s2688_s26  ;;  %v964_v35 = vmul.f32 %v960_v29, %v2999_v45 }
 0x9b5   :  { %v861_v31 = vsel %vm2810_vm6, %v1974_v30, %v2573_v26 }
 0x9b6   :  { %862 = vrot.lane.b32.xlu1 %v861_v31, %s2688_s26  ;;  %v865_v39 = vmul.f32 %v861_v31, %v3001_v48 }
 0xa26   :  { %v962_v32 = vpop.permute.xlu0 %961 }
 0xa27   :  { %v963_v33 = vmul.f32 %v962_v32, %v960_v29 }
 0xa28   :  { %v863_v14 = vpop.permute.xlu1 %862 }
 0xa29   :  { %v864_v34 = vmul.f32 %v863_v14, %v861_v31  ;;  %966 = vrot.lane.b32.xlu0 %v963_v33, %s2689_s27 }
 0xa2b   :  { %867 = vrot.lane.b32.xlu1 %v864_v34, %s2689_s27 }
 0xa9b   :  { %v967_v36 = vpop.permute.xlu0 %966 }
 0xa9c   :  { %v3044_v37 = vadd.f32 %v967_v36, %v964_v35 }
 0xa9d   :  { %v868_v40 = vpop.permute.xlu1 %867 }
 0xa9e   :  { %2574 = vtanh.f32 %v3044_v37  ;;  %v3048_v41 = vadd.f32 %v868_v40, %v865_v39 }
 0xaa0   :  { %2576 = vtanh.f32 %v3048_v41 }
 0xaa8   :  { %v2575_v43 = vpop.eup %2574 }
 0xaa9   :  { %972 = vrot.lane.b32.xlu0 %v2575_v43, %s2688_s26 }
 0xaaa   :  { %v2577_v44 = vpop.eup %2576 }
 0xaab   :  { %873 = vrot.lane.b32.xlu1 %v2577_v44, %s2688_s26 }
 0xb1b   :  { %v973_v46 = vpop.permute.xlu0 %972 }
 0xb1c   :  { %v975_v45 = vmul.f32 %v973_v46, %v960_v29 }
 0xb1d   :  { %v874_v50 = vpop.permute.xlu1 %873 }
 0xb1e   :  { %v876_v51 = vmul.f32 %v874_v50, %v861_v31  ;;  %977 = vrot.lane.b32.xlu1 %v975_v45, %s2689_s27  ;;  %v207_v45 = vadd.f32 %v2908_v63, %v2807_v15 }
 0xb20   :  { %981 = vrot.lane.b32.xlu0 %v876_v51, %s2688_s26 }
 0xb90   :  { %v978_v48 = vpop.permute.xlu1 %977 }
 0xb91   :  { %2271 = vmatmul.mubr.msk.f32.vlgmr.msra.gmra.mrb[16].mxu0 %vm239_vm3, %v978_v48 }
 0xb92   :  { %v982_v54 = vpop.permute.xlu0 %981  ;;  %2462 = vmatpush3.bf16.msra.mxu0 %v2833_v42  ;;  %2289 = vmatprep.mubr.msk.f32.mxu0 %vm2686_vm0, %v2687_v2 }
 0xb93   :  { %v984_v53 = vsel %vm239_vm3, %v978_v48, %v982_v54  ;;  %2463 = vmatprep.subr.bf16.mxu0 %v2685_v1 }
 0xb94   :  { %2260 = vmatmul.mubr.msk.f32.vlgmr.msra.gmra.mrb[6].mxu1 %vm359_vm7, %v984_v53 }
 0xb95   :  { %2474 = vmatpush3.bf16.msra.mxu1 %v2779_v6  ;;  %2300 = vmatprep.mubr.msk.f32.mxu1 %vm2686_vm0, %v2687_v2 }
 0xb96   :  { %2465 = vmatpush3.bf16.msra.mxu0 %v2850_v47  ;;  %2475 = vmatprep.subr.bf16.mxu1 %v2685_v1 }
 0xb97   :  { %2466 = vmatprep.subr.bf16.mxu0 %v2685_v1 }
 0xb99   :  { %2477 = vmatpush3.bf16.msra.mxu1 %v2790_v11 }
 0xb9a   :  { %2468 = vmatpush3.bf16.msra.mxu0 %v2870_v52  ;;  %2478 = vmatprep.subr.bf16.mxu1 %v2685_v1 }
 0xb9b   :  { %2469 = vmatprep.subr.bf16.mxu0 %v2685_v1 }
 0xb9e   :  { %2471 = vmatpush3.bf16.msra.mxu0 %v2888_v57 }
 0xb9f   :  { %2490 = vmatprep.subr.bf16.mxu0 %v2685_v1 }
 0xc64   :  { %v1152_v56 = vpop.f32.mrb[16].mxu0 }
 0xc65   :  { %v1156_v49 = vadd.f32 %v1152_v56, %v202_v55  ;;  %v2272_v58 = vpop.f32.mrb[17].mxu0 }
 0xc67   :  { %v1157_v59 = vmul.f32 2.0, %v1156_v49  ;;  %v1054_v60 = vpop.f32.mrb[6].mxu1 }
 0xc68   :  { %v1055_v38 = vadd.f32 %v2934_v9, %v1054_v60  ;;  %v2261_v5 = vpop.f32.mrb[7].mxu1 }
 0xc69   :  { %v1158_v7 = vsel %vm2810_vm6, %v1157_v59, %v1156_v49 }
 0xc6a   :  { %v1982_v8 = vmul.f32 -1.442695, %v1158_v7  ;;  %v1058_v10 = vmul.f32 2.0, %v1055_v38 }
 0xc6c   :  { %2578 = vpow2.f32 %v1982_v8  ;;  %v1059_v12 = vsel %vm2810_vm6, %v1058_v10, %v1055_v38 }
 0xc6d   :  { %v1979_v13 = vmul.f32 -1.442695, %v1059_v12 }
 0xc6f   :  { %2580 = vpow2.f32 %v1979_v13 }
 0xc76   :  { %v2579_v0 = vpop.eup %2578 }
 0xc77   :  { %v1162_v16 = vadd.f32 1.0, %v2579_v0 }
 0xc79   :  { %v2581_v17 = vpop.eup %2580  ;;  %2582 = vrcp.f32 %v1162_v16 }
 0xc7a   :  { %v1063_v18 = vadd.f32 1.0, %v2581_v17 }
 0xc7c   :  { %2584 = vrcp.f32 %v1063_v18 }
 0xc83   :  { %v2583_v19 = vpop.eup %2582 }
 0xc84   :  { %v1165_v20 = vmul.f32 2.0, %v2583_v19 }
 0xc86   :  { %v2585_v61 = vpop.eup %2584  ;;  %v1983_v21 = vadd.f32 -1.0, %v1165_v20 }
 0xc87   :  { %v1066_v23 = vmul.f32 2.0, %v2585_v61 }
 0xc88   :  { %v1167_v24 = vsel %vm2810_vm6, %v1983_v21, %v2583_v19 }
 0xc89   :  { %1168 = vrot.lane.b32.xlu0 %v1167_v24, %s2688_s26  ;;  %v1980_v25 = vadd.f32 -1.0, %v1066_v23  ;;  %v1171_v30 = vmul.f32 %v1167_v24, %v3044_v37 }
 0xc8b   :  { %v1068_v62 = vsel %vm2810_vm6, %v1980_v25, %v2585_v61 }
 0xc8c   :  { %1069 = vrot.lane.b32.xlu1 %v1068_v62, %s2688_s26  ;;  %v1072_v33 = vmul.f32 %v1068_v62, %v3048_v41 }
 0xcfb   :  { %v1169_v26 = vpop.permute.xlu0 %1168 }
 0xcfc   :  { %v1170_v27 = vmul.f32 %v1169_v26, %v1167_v24 }
 0xcfe   :  { %v1070_v28 = vpop.permute.xlu1 %1069  ;;  %1173 = vrot.lane.b32.xlu0 %v1170_v27, %s2689_s27 }
 0xcff   :  { %v1071_v29 = vmul.f32 %v1070_v28, %v1068_v62 }
 0xd01   :  { %1074 = vrot.lane.b32.xlu1 %v1071_v29, %s2689_s27 }
 0xd70   :  { %v1174_v31 = vpop.permute.xlu0 %1173 }
 0xd71   :  { %v3090_v32 = vadd.f32 %v1174_v31, %v1171_v30 }
 0xd73   :  { %2586 = vtanh.f32 %v3090_v32  ;;  %v1075_v14 = vpop.permute.xlu1 %1074 }
 0xd74   :  { %v3094_v34 = vadd.f32 %v1075_v14, %v1072_v33 }
 0xd76   :  { %2588 = vtanh.f32 %v3094_v34 }
 0xd7d   :  { %v2587_v35 = vpop.eup %2586 }
 0xd7e   :  { %1179 = vrot.lane.b32.xlu0 %v2587_v35, %s2688_s26 }
 0xd80   :  { %v2589_v36 = vpop.eup %2588 }
 0xd81   :  { %1080 = vrot.lane.b32.xlu1 %v2589_v36, %s2688_s26 }
 0xdf0   :  { %v1180_v39 = vpop.permute.xlu0 %1179 }
 0xdf1   :  { %v1182_v37 = vmul.f32 %v1180_v39, %v1167_v24 }
 0xdf3   :  { %v1081_v40 = vpop.permute.xlu1 %1080  ;;  %1184 = vrot.lane.b32.xlu1 %v1182_v37, %s2689_s27 }
 0xdf4   :  { %v1083_v43 = vmul.f32 %v1081_v40, %v1068_v62 }
 0xdf6   :  { %1188 = vrot.lane.b32.xlu0 %v1083_v43, %s2688_s26 }
 0xe65   :  { %v1185_v41 = vpop.permute.xlu1 %1184 }
 0xe66   :  { %2301 = vmatmul.mubr.msk.f32.vlgmr.msra.gmra.mrb[8].mxu1 %vm239_vm3, %v1185_v41 }
 0xe67   :  { %2480 = vmatpush3.bf16.msra.mxu1 %v2833_v42  ;;  %2319 = vmatprep.mubr.msk.f32.mxu1 %vm2686_vm0, %v2687_v2 }
 0xe68   :  { %v1189_v44 = vpop.permute.xlu0 %1188  ;;  %2481 = vmatprep.subr.bf16.mxu1 %v2685_v1 }
 0xe69   :  { %v1191_v46 = vsel %vm239_vm3, %v1185_v41, %v1189_v44 }
 0xe6a   :  { %2290 = vmatmul.mubr.msk.f32.vlgmr.msra.gmra.mrb[18].mxu0 %vm359_vm7, %v1191_v46 }
 0xe6b   :  { %2492 = vmatpush3.bf16.msra.mxu0 %v2779_v6  ;;  %2483 = vmatpush3.bf16.msra.mxu1 %v2850_v47 }
 0xe6c   :  { %2493 = vmatprep.subr.bf16.mxu0 %v2685_v1  ;;  %2484 = vmatprep.subr.bf16.mxu1 %v2685_v1 }
 0xe6d   :  { %2330 = vmatprep.mubr.msk.f32.mxu0 %vm2686_vm0, %v2687_v2 }
 0xe6f   :  { %2495 = vmatpush3.bf16.msra.mxu0 %v2790_v11  ;;  %2486 = vmatpush3.bf16.msra.mxu1 %v2870_v52 }
 0xe70   :  { %2487 = vmatprep.subr.bf16.mxu1 %v2685_v1  ;;  %2496 = vmatprep.subr.bf16.mxu0 %v2685_v1 }
 0xe73   :  { %2489 = vmatpush3.bf16.msra.mxu1 %v2888_v57 }
 0xe74   :  { %2508 = vmatprep.subr.bf16.mxu1 %v2685_v1 }
 0xf39   :  { %v1359_v50 = vpop.f32.mrb[8].mxu1 }
 0xf3a   :  { %v1363_v51 = vadd.f32 %v1359_v50, %v207_v45  ;;  %v2302_v48 = vpop.f32.mrb[9].mxu1 }
 0xf3c   :  { %v1364_v54 = vmul.f32 2.0, %v1363_v51 }
 0xf3d   :  { %v1261_v53 = vpop.f32.mrb[18].mxu0 }
 0xf3e   :  { %v1365_v55 = vsel %vm2810_vm6, %v1364_v54, %v1363_v51  ;;  %v1262_v56 = vadd.f32 %v2934_v9, %v1261_v53  ;;  %v2291_v49 = vpop.f32.mrb[19].mxu0 }
 0xf3f   :  { %v1988_v58 = vmul.f32 -1.442695, %v1365_v55 }
 0xf40   :  { %v1265_v59 = vmul.f32 2.0, %v1262_v56 }
 0xf41   :  { %2590 = vpow2.f32 %v1988_v58 }
 0xf42   :  { %v1266_v60 = vsel %vm2810_vm6, %v1265_v59, %v1262_v56 }
 0xf43   :  { %v1985_v38 = vmul.f32 -1.442695, %v1266_v60 }
 0xf45   :  { %2592 = vpow2.f32 %v1985_v38 }
 0xf4b   :  { %v2591_v63 = vpop.eup %2590 }
 0xf4c   :  { %v1369_v5 = vadd.f32 1.0, %v2591_v63 }
 0xf4e   :  { %2594 = vrcp.f32 %v1369_v5 }
 0xf4f   :  { %v2593_v7 = vpop.eup %2592 }
 0xf50   :  { %v1270_v8 = vadd.f32 1.0, %v2593_v7 }
 0xf52   :  { %2596 = vrcp.f32 %v1270_v8 }
 0xf58   :  { %v2595_v10 = vpop.eup %2594 }
 0xf59   :  { %v1372_v12 = vmul.f32 2.0, %v2595_v10 }
 0xf5b   :  { %v1989_v13 = vadd.f32 -1.0, %v1372_v12 }
 0xf5c   :  { %v2597_v0 = vpop.eup %2596 }
 0xf5d   :  { %v1374_v16 = vsel %vm2810_vm6, %v1989_v13, %v2595_v10  ;;  %v1273_v17 = vmul.f32 2.0, %v2597_v0 }
 0xf5e   :  { %1375 = vrot.lane.b32.xlu0 %v1374_v16, %s2688_s26  ;;  %v1378_v24 = vmul.f32 %v1374_v16, %v3090_v32 }
 0xf5f   :  { %v1986_v18 = vadd.f32 -1.0, %v1273_v17 }
 0xf61   :  { %v1275_v19 = vsel %vm2810_vm6, %v1986_v18, %v2597_v0 }
 0xf62   :  { %1276 = vrot.lane.b32.xlu1 %v1275_v19, %s2688_s26  ;;  %v1279_v26 = vmul.f32 %v1275_v19, %v3094_v34 }
 0xfd0   :  { %v1376_v20 = vpop.permute.xlu0 %1375 }
 0xfd1   :  { %v1377_v61 = vmul.f32 %v1376_v20, %v1374_v16 }
 0xfd3   :  { %1380 = vrot.lane.b32.xlu0 %v1377_v61, %s2689_s27 }
 0xfd4   :  { %v1277_v21 = vpop.permute.xlu1 %1276 }
 0xfd5   :  { %v1278_v23 = vmul.f32 %v1277_v21, %v1275_v19 }
 0xfd7   :  { %1281 = vrot.lane.b32.xlu1 %v1278_v23, %s2689_s27 }
0x1045   :  { %v1381_v25 = vpop.permute.xlu0 %1380 }
0x1046   :  { %v3136_v62 = vadd.f32 %v1381_v25, %v1378_v24 }
0x1048   :  { %2598 = vtanh.f32 %v3136_v62 }
0x1049   :  { %v1282_v27 = vpop.permute.xlu1 %1281 }
0x104a   :  { %v3140_v28 = vadd.f32 %v1282_v27, %v1279_v26 }
0x104c   :  { %2600 = vtanh.f32 %v3140_v28 }
0x1052   :  { %v2599_v29 = vpop.eup %2598 }
0x1053   :  { %1386 = vrot.lane.b32.xlu0 %v2599_v29, %s2688_s26 }
0x1056   :  { %v2601_v30 = vpop.eup %2600 }
0x1057   :  { %1287 = vrot.lane.b32.xlu1 %v2601_v30, %s2688_s26 }
0x10c5   :  { %v1387_v31 = vpop.permute.xlu0 %1386 }
0x10c6   :  { %v1389_v32 = vmul.f32 %v1387_v31, %v1374_v16 }
0x10c8   :  { %1391 = vrot.lane.b32.xlu1 %v1389_v32, %s2689_s27 }
0x10c9   :  { %v1288_v33 = vpop.permute.xlu1 %1287 }
0x10ca   :  { %v1290_v14 = vmul.f32 %v1288_v33, %v1275_v19 }
0x10cc   :  { %1395 = vrot.lane.b32.xlu0 %v1290_v14, %s2688_s26 }
0x113a   :  { %v1392_v34 = vpop.permute.xlu1 %1391 }
0x113b   :  { %2331 = vmatmul.mubr.msk.f32.vlgmr.msra.gmra.mrb[20].mxu0 %vm239_vm3, %v1392_v34 }
0x113c   :  { %2498 = vmatpush3.bf16.msra.mxu0 %v2833_v42  ;;  %2349 = vmatprep.mubr.msk.f32.mxu0 %vm2686_vm0, %v2687_v2 }
0x113d   :  { %2499 = vmatprep.subr.bf16.mxu0 %v2685_v1 }
0x113e   :  { %v1396_v35 = vpop.permute.xlu0 %1395 }
0x113f   :  { %v1398_v36 = vsel %vm239_vm3, %v1392_v34, %v1396_v35 }
0x1140   :  { %2320 = vmatmul.mubr.msk.f32.vlgmr.msra.gmra.mrb[10].mxu1 %vm359_vm7, %v1398_v36  ;;  %2501 = vmatpush3.bf16.msra.mxu0 %v2850_v47 }
0x1141   :  { %2510 = vmatpush3.bf16.msra.mxu1 %v2779_v6  ;;  %2502 = vmatprep.subr.bf16.mxu0 %v2685_v1  ;;  %v212_v6 = vadd.f32 %v2807_v15, %v2914_v4 }
0x1142   :  { %2511 = vmatprep.subr.bf16.mxu1 %v2685_v1  ;;  %2360 = vmatprep.mubr.msk.f32.mxu1 %vm2686_vm0, %v2687_v2 }
0x1144   :  { %2504 = vmatpush3.bf16.msra.mxu0 %v2870_v52 }
0x1145   :  { %2513 = vmatpush3.bf16.msra.mxu1 %v2790_v11  ;;  %2505 = vmatprep.subr.bf16.mxu0 %v2685_v1 }
0x1146   :  { %2514 = vmatprep.subr.bf16.mxu1 %v2685_v1 }
0x1148   :  { %2507 = vmatpush3.bf16.msra.mxu0 %v2888_v57 }
0x120e   :  { %v1566_v39 = vpop.f32.mrb[20].mxu0 }
0x120f   :  { %v1570_v37 = vadd.f32 %v1566_v39, %v212_v6  ;;  %v2332_v40 = vpop.f32.mrb[21].mxu0 }
0x1211   :  { %v1571_v43 = vmul.f32 2.0, %v1570_v37 }
0x1213   :  { %v1572_v41 = vsel %vm2810_vm6, %v1571_v43, %v1570_v37  ;;  %v1468_v44 = vpop.f32.mrb[10].mxu1 }
0x1214   :  { %v1994_v46 = vmul.f32 -1.442695, %v1572_v41  ;;  %v1469_v11 = vadd.f32 %v2934_v9, %v1468_v44  ;;  %v2321_v45 = vpop.f32.mrb[11].mxu1 }
0x1216   :  { %2602 = vpow2.f32 %v1994_v46  ;;  %v1472_v50 = vmul.f32 2.0, %v1469_v11 }
0x1218   :  { %v1473_v51 = vsel %vm2810_vm6, %v1472_v50, %v1469_v11 }
0x1219   :  { %v1991_v48 = vmul.f32 -1.442695, %v1473_v51 }
0x121b   :  { %2604 = vpow2.f32 %v1991_v48 }
0x1220   :  { %v2603_v15 = vpop.eup %2602 }
0x1221   :  { %v1576_v4 = vadd.f32 1.0, %v2603_v15 }
0x1223   :  { %2606 = vrcp.f32 %v1576_v4 }
0x1225   :  { %v2605_v54 = vpop.eup %2604 }
0x1226   :  { %v1477_v53 = vadd.f32 1.0, %v2605_v54 }
0x1228   :  { %2608 = vrcp.f32 %v1477_v53 }
0x122d   :  { %v2607_v55 = vpop.eup %2606 }
0x122e   :  { %v1579_v56 = vmul.f32 2.0, %v2607_v55 }
0x1230   :  { %v1995_v49 = vadd.f32 -1.0, %v1579_v56 }
0x1232   :  { %v2609_v58 = vpop.eup %2608  ;;  %v1581_v59 = vsel %vm2810_vm6, %v1995_v49, %v2607_v55 }
0x1233   :  { %1582 = vrot.lane.b32.xlu0 %v1581_v59, %s2688_s26  ;;  %v1480_v60 = vmul.f32 2.0, %v2609_v58  ;;  %v1585_v12 = vmul.f32 %v1581_v59, %v3136_v62 }
0x1235   :  { %v1992_v38 = vadd.f32 -1.0, %v1480_v60 }
0x1237   :  { %v1482_v63 = vsel %vm2810_vm6, %v1992_v38, %v2609_v58 }
0x1238   :  { %1483 = vrot.lane.b32.xlu1 %v1482_v63, %s2688_s26  ;;  %v1486_v16 = vmul.f32 %v1482_v63, %v3140_v28 }
0x12a5   :  { %v1583_v5 = vpop.permute.xlu0 %1582 }
0x12a6   :  { %v1584_v7 = vmul.f32 %v1583_v5, %v1581_v59 }
0x12a8   :  { %1587 = vrot.lane.b32.xlu0 %v1584_v7, %s2689_s27 }
0x12aa   :  { %v1484_v8 = vpop.permute.xlu1 %1483 }
0x12ab   :  { %v1485_v10 = vmul.f32 %v1484_v8, %v1482_v63 }
0x12ad   :  { %1488 = vrot.lane.b32.xlu1 %v1485_v10, %s2689_s27 }
0x131a   :  { %v1588_v13 = vpop.permute.xlu0 %1587 }
0x131b   :  { %v3181_v0 = vadd.f32 %v1588_v13, %v1585_v12 }
0x131d   :  { %2610 = vtanh.f32 %v3181_v0 }
0x131f   :  { %v1489_v17 = vpop.permute.xlu1 %1488 }
0x1320   :  { %v3185_v18 = vadd.f32 %v1489_v17, %v1486_v16 }
0x1322   :  { %2612 = vtanh.f32 %v3185_v18 }
0x1327   :  { %v2611_v19 = vpop.eup %2610 }
0x1328   :  { %1593 = vrot.lane.b32.xlu0 %v2611_v19, %s2688_s26 }
0x132c   :  { %v2613_v20 = vpop.eup %2612 }
0x132d   :  { %1494 = vrot.lane.b32.xlu1 %v2613_v20, %s2688_s26 }
0x139a   :  { %v1594_v61 = vpop.permute.xlu0 %1593 }
0x139b   :  { %v1596_v21 = vmul.f32 %v1594_v61, %v1581_v59 }
0x139d   :  { %1598 = vrot.lane.b32.xlu1 %v1596_v21, %s2689_s27 }
0x139f   :  { %v1495_v23 = vpop.permute.xlu1 %1494 }
0x13a0   :  { %v1497_v24 = vmul.f32 %v1495_v23, %v1482_v63 }
0x13a2   :  { %1602 = vrot.lane.b32.xlu0 %v1497_v24, %s2688_s26  ;;  %v2005_v24 = vld [vmem:[%s3253_s8] ss:$0 sm:$0xff] }
0x140f   :  { %v1599_v25 = vpop.permute.xlu1 %1598 }
0x1410   :  { %2361 = vmatmul.mubr.msk.f32.vlgmr.msra.gmra.mrb[12].mxu1 %vm239_vm3, %v1599_v25 }
0x1411   :  { %2516 = vmatpush3.bf16.msra.mxu1 %v2833_v42  ;;  %2379 = vmatprep.mubr.msk.f32.mxu1 %vm2686_vm0, %v2687_v2  ;;  %v2632_v2 = vld [vmem:[%s3250_s5] ss:$0 sm:$0xff] }
0x1412   :  { %2517 = vmatprep.subr.bf16.mxu1 %v2685_v1  ;;  %v217_v42 = vadd.f32 %v2632_v2, %v2912_v3 }
0x1414   :  { %v1603_v62 = vpop.permute.xlu0 %1602 }
0x1415   :  { %v1605_v26 = vsel %vm239_vm3, %v1599_v25, %v1603_v62  ;;  %2519 = vmatpush3.bf16.msra.mxu1 %v2850_v47 }
0x1416   :  { %2350 = vmatmul.mubr.msk.f32.vlgmr.msra.gmra.mrb[22].mxu0 %vm359_vm7, %v1605_v26  ;;  %2520 = vmatprep.subr.bf16.mxu1 %v2685_v1 }
0x1419   :  { %2522 = vmatpush3.bf16.msra.mxu1 %v2870_v52 }
0x141a   :  { %2523 = vmatprep.subr.bf16.mxu1 %v2685_v1 }
0x141d   :  { %2525 = vmatpush3.bf16.msra.mxu1 %v2888_v57 }
0x14e3   :  { %v1773_v27 = vpop.f32.mrb[12].mxu1 }
0x14e4   :  { %v1777_v28 = vadd.f32 %v1773_v27, %v217_v42  ;;  %v2362_v29 = vpop.f32.mrb[13].mxu1 }
0x14e6   :  { %v1778_v47 = vmul.f32 2.0, %v1777_v28 }
0x14e8   :  { %v1779_v30 = vsel %vm2810_vm6, %v1778_v47, %v1777_v28 }
0x14e9   :  { %v2000_v31 = vmul.f32 -1.442695, %v1779_v30  ;;  %v1675_v32 = vpop.f32.mrb[22].mxu0  ;;  %v2006_v30 = vld [vmem:[#allocation2] ss:$0 sm:$0xff] }
0x14ea   :  { %v1676_v52 = vadd.f32 %v2934_v9, %v1675_v32  ;;  %v2351_v1 = vpop.f32.mrb[23].mxu0 }
0x14eb   :  { %2614 = vpow2.f32 %v2000_v31 }
0x14ec   :  { %v1679_v57 = vmul.f32 2.0, %v1676_v52 }
0x14ee   :  { %v1680_v33 = vsel %vm2810_vm6, %v1679_v57, %v1676_v52 }
0x14ef   :  { %v1997_v14 = vmul.f32 -1.442695, %v1680_v33 }
0x14f1   :  { %2616 = vpow2.f32 %v1997_v14 }
0x14f5   :  { %v2615_v3 = vpop.eup %2614 }
0x14f6   :  { %v1783_v34 = vadd.f32 1.0, %v2615_v3 }
0x14f8   :  { %2618 = vrcp.f32 %v1783_v34 }
0x14fb   :  { %v2617_v35 = vpop.eup %2616 }
0x14fc   :  { %v1684_v36 = vadd.f32 1.0, %v2617_v35 }
0x14fe   :  { %2620 = vrcp.f32 %v1684_v36 }
0x1502   :  { %v2619_v6 = vpop.eup %2618 }
0x1503   :  { %v1786_v39 = vmul.f32 2.0, %v2619_v6 }
0x1505   :  { %v2001_v37 = vadd.f32 -1.0, %v1786_v39 }
0x1507   :  { %v1788_v40 = vsel %vm2810_vm6, %v2001_v37, %v2619_v6 }
0x1508   :  { %v2621_v43 = vpop.eup %2620  ;;  %1789 = vrot.lane.b32.xlu0 %v1788_v40, %s2688_s26  ;;  %v1792_v48 = vmul.f32 %v1788_v40, %v3181_v0 }
0x1509   :  { %v1687_v41 = vmul.f32 2.0, %v2621_v43 }
0x150b   :  { %v1998_v44 = vadd.f32 -1.0, %v1687_v41 }
0x150d   :  { %v1689_v46 = vsel %vm2810_vm6, %v1998_v44, %v2621_v43 }
0x150e   :  { %1690 = vrot.lane.b32.xlu1 %v1689_v46, %s2688_s26  ;;  %v1693_v54 = vmul.f32 %v1689_v46, %v3185_v18 }
0x157a   :  { %v1790_v11 = vpop.permute.xlu0 %1789 }
0x157b   :  { %v1791_v45 = vmul.f32 %v1790_v11, %v1788_v40 }
0x157d   :  { %1794 = vrot.lane.b32.xlu0 %v1791_v45, %s2689_s27 }
0x1580   :  { %v1691_v50 = vpop.permute.xlu1 %1690 }
0x1581   :  { %v1692_v51 = vmul.f32 %v1691_v50, %v1689_v46 }
0x1583   :  { %1695 = vrot.lane.b32.xlu1 %v1692_v51, %s2689_s27 }
0x15ef   :  { %v1795_v15 = vpop.permute.xlu0 %1794 }
0x15f0   :  { %v1797_v4 = vadd.f32 %v1795_v15, %v1792_v48 }
0x15f2   :  { %2622 = vtanh.f32 %v1797_v4 }
0x15f5   :  { %v1696_v53 = vpop.permute.xlu1 %1695 }
0x15f6   :  { %v1698_v55 = vadd.f32 %v1696_v53, %v1693_v54 }
0x15f8   :  { %2624 = vtanh.f32 %v1698_v55 }
0x15fc   :  { %v2623_v56 = vpop.eup %2622 }
0x15fd   :  { %1800 = vrot.lane.b32.xlu0 %v2623_v56, %s2688_s26 }
0x1602   :  { %v2625_v49 = vpop.eup %2624 }
0x1603   :  { %1701 = vrot.lane.b32.xlu1 %v2625_v49, %s2688_s26 }
0x166f   :  { %v1801_v58 = vpop.permute.xlu0 %1800 }
0x1670   :  { %v1803_v59 = vmul.f32 %v1801_v58, %v1788_v40 }
0x1672   :  { %1805 = vrot.lane.b32.xlu1 %v1803_v59, %s2689_s27 }
0x1675   :  { %v1702_v60 = vpop.permute.xlu1 %1701 }
0x1676   :  { %v1704_v38 = vmul.f32 %v1702_v60, %v1689_v46 }
0x1678   :  { %1809 = vrot.lane.b32.xlu0 %v1704_v38, %s2688_s26 }
0x16e4   :  { %v1806_v63 = vpop.permute.xlu1 %1805 }
0x16ea   :  { %v1810_v5 = vpop.permute.xlu0 %1809 }
0x16eb   :  { %v1812_v7 = vsel %vm239_vm3, %v1806_v63, %v1810_v5 }
0x16ec   :  { %2380 = vmatmul.mubr.msk.f32.vlgmr.msra.gmra.mrb[14].mxu1 %vm359_vm7, %v1812_v7 }
0x17bf   :  { %v1882_v8 = vpop.f32.mrb[14].mxu1 }
0x17c0   :  { %v1883_v10 = vadd.f32 %v2934_v9, %v1882_v8  ;;  %v2381_v12 = vpop.f32.mrb[15].mxu1 }
0x17c2   :  { %v1886_v13 = vmul.f32 2.0, %v1883_v10 }
0x17c4   :  { %v1887_v0 = vsel %vm2810_vm6, %v1886_v13, %v1883_v10 }
0x17c5   :  { %v2003_v16 = vmul.f32 -1.442695, %v1887_v0 }
0x17c7   :  { %2626 = vpow2.f32 %v2003_v16 }
0x17d1   :  { %v2627_v17 = vpop.eup %2626 }
0x17d2   :  { %v1891_v18 = vadd.f32 1.0, %v2627_v17 }
0x17d4   :  { %2628 = vrcp.f32 %v1891_v18 }
0x17de   :  { %v2629_v19 = vpop.eup %2628 }
0x17df   :  { %v1894_v20 = vmul.f32 2.0, %v2629_v19 }
0x17e1   :  { %v2004_v61 = vadd.f32 -1.0, %v1894_v20 }
0x17e3   :  { %v1896_v21 = vsel %vm2810_vm6, %v2004_v61, %v2629_v19 }
0x17e4   :  { %1897 = vrot.lane.b32.xlu1 %v1896_v21, %s2688_s26  ;;  %v1900_v25 = vmul.f32 %v1896_v21, %v1698_v55 }
0x1856   :  { %v1898_v23 = vpop.permute.xlu1 %1897 }
0x1857   :  { %v1899_v9 = vmul.f32 %v1898_v23, %v1896_v21 }
0x1859   :  { %1902 = vrot.lane.b32.xlu0 %v1899_v9, %s2689_s27 }
0x185d   :  { %1918 = vrot.lane.b32.xlu0 %v2005_v24, %s2690_s18 }
0x18cb   :  { %v1903_v62 = vpop.permute.xlu0 %1902 }
0x18cc   :  { %v1905_v26 = vadd.f32 %v1903_v62, %v1900_v25 }
0x18ce   :  { %2630 = vtanh.f32 %v1905_v26 }
0x18cf   :  { %v1919_v42 = vpop.permute.xlu0 %1918 }
0x18d8   :  { %v2631_v2 = vpop.eup %2630 }
0x18d9   :  { %1908 = vrot.lane.b32.xlu1 %v2631_v2, %s2688_s26 }
0x194b   :  { %v1909_v22 = vpop.permute.xlu1 %1908 }
0x194c   :  { %v1911_v27 = vmul.f32 %v1909_v22, %v1896_v21 }
0x194e   :  { %v1921_v28 = vmul.f32 %v1919_v42, %v1911_v27 }
0x1950   :  { %1923 = vrot.lane.b32.xlu1 %v1921_v28, %s2689_s27 }
0x19c2   :  { %v1924_v29 = vpop.permute.xlu1 %1923 }
0x19c3   :  { %v1926_v47 = vsel %vm239_vm3, %v1924_v29, 0.0 }
0x19c4   :  { %1927 = vadd.xlane.f32.xlu0 %v1926_v47 }
0x1a51   :  { %v1928_v31 = vpop.xlane.xlu0 %1927 }
0x1a52   :  { %v1936_v32 = vadd.f32 %v2006_v30, %v1928_v31 }
0x1a54   :  { %1938 = vst.msk [vmem:[%s3255_s10] sm:$0xff] %vm1937_vm8, %v1936_v32 }
0x1a55   :  { %1943 = vsyncpa [#allocation4], 1 }
0x1a56   :  { %1944 = vsyncpa [#allocation6], 1 }

</bundles_post_ra>
